<compile_context>
chip_gen: v7x
topology: tpu7x:2x2x1
jax: 0.10.0
libtpu: 0.0.40
codegen_flags: <defaults>
</compile_context>

<pallas_src>
import functools
import math

import jax
import jax.numpy as jnp
from jax.experimental import pallas as pl
from jax.experimental.pallas import tpu as pltpu

# ---------------------------------------------------------------------------
# Small-config "BERT" (same structure as bert-base-cased, scaled down)
# ---------------------------------------------------------------------------
B = 2            # batch
S = 8            # sequence length        (bert-base: up to 512)
H = 32           # hidden size            (bert-base: 768)
NH = 4           # attention heads        (bert-base: 12)
HD = H // NH     # head dim               (bert-base: 64)
FF = 4 * H       # intermediate size      (bert-base: 3072)
LAYERS = 2       # encoder layers         (bert-base: 12)
VOCAB = 64       # vocab size
MAX_POS = 16     # max position embeddings
NUM_VOXELS = 64  # fMRI voxels            (real model: 37913)
LN_EPS = 1e-12   # BERT LayerNorm eps

# TODO(synk): the HuggingFace tokenizer (string -> token ids) has no Pallas
# equivalent; the kernel pipeline consumes pre-tokenized int32 ids.


def _voxel_tile(num_voxels):
    # Prefer big lane-dense tiles so the real 37913-voxel head runs in ~19
    # grid steps (2048-wide) instead of 297 steps (128-wide).
    for t in (2048, 1024, 512, 256, 128):
        if num_voxels >= t:
            return t
    return 128


V_TILE = _voxel_tile(NUM_VOXELS)
V_PAD = -(-NUM_VOXELS // V_TILE) * V_TILE   # pad voxel axis to a tile multiple


def _vmem_limit_bytes():
    """Per-generation scoped-VMEM budget: ~48 MiB on 64-MiB-VMEM chips (v7x),
    ~100 MiB on 128-MiB chips (v5e/v6e)."""
    cap = 64 * 1024 * 1024
    try:
        info = pltpu.get_tpu_info()
        cap = int(getattr(info, "vmem_capacity_bytes", cap) or cap)
    except Exception:
        pass
    return int(min(max(cap - 16 * 1024 * 1024, 32 * 1024 * 1024),
                   100 * 1024 * 1024))


VMEM_LIMIT = _vmem_limit_bytes()


# ---------------------------------------------------------------------------
# Helpers (element-wise math in f32; bf16 only at MXU inputs)
# ---------------------------------------------------------------------------
def _layer_norm(x, gamma, beta, eps=LN_EPS):
    # x: (..., D) f32, gamma/beta: (1, D) f32 (broadcast over leading dims)
    mean = jnp.mean(x, axis=-1, keepdims=True)
    var = jnp.mean(jnp.square(x - mean), axis=-1, keepdims=True)
    return (x - mean) * jax.lax.rsqrt(var + eps) * gamma + beta


def _gelu_exact(x):
    # HF BERT "gelu": 0.5 * x * (1 + erf(x / sqrt(2)))  (kept exact for parity;
    # a tanh approximation would move work from the VPU to the idle EUP slot)
    return 0.5 * x * (1.0 + jax.lax.erf(x * (1.0 / math.sqrt(2.0))))


# ---------------------------------------------------------------------------
# Kernel 1: fused BERT encoder
#   grid = (batch_blocks, LAYERS); hidden state carried in out_ref (block
#   index constant over the layer axis => VMEM-resident, one writeback per
#   batch block); per-batch-element pl.loop bounds activation VMEM.
# ---------------------------------------------------------------------------
def _bert_encoder_kernel(x0_ref, bias_ref,
                         wq_ref, bq_ref, wk_ref, bk_ref, wv_ref, bv_ref,
                         wo_ref, bo_ref, ln1_g_ref, ln1_b_ref,
                         w1_ref, b1_ref, w2_ref, b2_ref,
                         ln2_g_ref, ln2_b_ref,
                         out_ref, ctx_scr, *, num_heads):
    l = pl.program_id(1)                       # layer index (inner grid axis)

    @pl.when(l == 0)
    def _init():                               # initialize the carried state
        out_ref[...] = x0_ref[...]

    bt, seq, hid = out_ref.shape
    hd = hid // num_heads

    @pl.loop(0, bt)                            # chunk the layer over batch
    def _per_batch(b):
        xb = out_ref[b]                        # (S, H) f32 hidden state
        xb16 = xb.astype(jnp.bfloat16)         # cast once, reused for Q/K/V

        # Full-width QKV projections (1/sqrt(hd) folded into wq/bq at init).
        q = jnp.dot(xb16, wq_ref[...],
                    preferred_element_type=jnp.float32) + bq_ref[...]
        k = jnp.dot(xb16, wk_ref[...],
                    preferred_element_type=jnp.float32) + bk_ref[...]
        v = jnp.dot(xb16, wv_ref[...],
                    preferred_element_type=jnp.float32) + bv_ref[...]
        q16 = q.astype(jnp.bfloat16)
        k16 = k.astype(jnp.bfloat16)
        v16 = v.astype(jnp.bfloat16)

        bias_row = bias_ref[b]                 # (1, S) additive mask, hoisted

        # Per-head attention; each head's context goes straight into its
        # lane slice of ctx_scr (no concat / no NH live context tensors).
        for h in range(num_heads):
            sl = slice(h * hd, (h + 1) * hd)
            s = jnp.einsum('qd,kd->qk', q16[:, sl], k16[:, sl],
                           preferred_element_type=jnp.float32)
            s = s + bias_row                   # HF (1-mask)*-10000 bias
            s = s - jnp.max(s, axis=-1, keepdims=True)
            p = jnp.exp(s)
            p = p * pl.reciprocal(jnp.sum(p, axis=-1, keepdims=True),
                                  approx=True)
            ctx_scr[:, sl] = jnp.einsum('qk,kd->qd', p.astype(jnp.bfloat16),
                                        v16[:, sl],
                                        preferred_element_type=jnp.float32)
        # TODO(synk): for S > 512, tile this over query chunks (flash-style
        # online softmax) to keep attention VMEM flat in S.

        # Output projection at full MXU width + residual + LN.
        attn = jnp.dot(ctx_scr[...].astype(jnp.bfloat16), wo_ref[...],
                       preferred_element_type=jnp.float32) + bo_ref[...]
        x1 = _layer_norm(xb + attn, ln1_g_ref[...], ln1_b_ref[...])

        # FFN for this batch element only: the (S, FF) f32 intermediate is
        # ~6 MiB at bert-base dims instead of a (B,S,FF) 48 MiB tensor.
        h1 = _gelu_exact(jnp.dot(x1.astype(jnp.bfloat16), w1_ref[...],
                                 preferred_element_type=jnp.float32)
                         + b1_ref[...])
        y = jnp.dot(h1.astype(jnp.bfloat16), w2_ref[...],
                    preferred_element_type=jnp.float32) + b2_ref[...]
        out_ref[b] = _layer_norm(x1 + y, ln2_g_ref[...], ln2_b_ref[...])


def bert_encoder(x0, attn_bias, params, *, num_heads=NH):
    bsz, seq, hid = x0.shape
    layers = params['wq'].shape[0]
    ff = params['w1'].shape[-1]

    # Split the batch into (up to) two blocks -> leading "parallel" grid axis
    # keeps v7x's second TensorCore busy; on 1-TC chips the extra per-block
    # weight re-streaming is hidden behind compute by the pipeline.
    bt = bsz // 2 if (bsz >= 2 and bsz % 2 == 0) else bsz
    n_blocks = bsz // bt

    def per_layer(d1, d2):
        # per-layer block of a (LAYERS, d1, d2) stacked parameter
        return pl.BlockSpec((None, d1, d2), lambda bb, l: (l, 0, 0))

    in_specs = [
        pl.BlockSpec((bt, seq, hid), lambda bb, l: (bb, 0, 0)),   # x0
        pl.BlockSpec((bt, 1, seq), lambda bb, l: (bb, 0, 0)),     # mask bias
        per_layer(hid, hid), per_layer(1, hid),   # wq, bq
        per_layer(hid, hid), per_layer(1, hid),   # wk, bk
        per_layer(hid, hid), per_layer(1, hid),   # wv, bv
        per_layer(hid, hid), per_layer(1, hid),   # wo, bo
        per_layer(1, hid), per_layer(1, hid),     # ln1 gamma/beta
        per_layer(hid, ff), per_layer(1, ff),     # w1, b1
        per_layer(ff, hid), per_layer(1, hid),    # w2, b2
        per_layer(1, hid), per_layer(1, hid),     # ln2 gamma/beta
    ]

    kernel = functools.partial(_bert_encoder_kernel, num_heads=num_heads)
    return pl.pallas_call(
        kernel,
        out_shape=jax.ShapeDtypeStruct((bsz, seq, hid), jnp.float32),
        grid_spec=pltpu.PrefetchScalarGridSpec(
            num_scalar_prefetch=0,
            grid=(n_blocks, layers),
            in_specs=in_specs,
            out_specs=pl.BlockSpec((bt, seq, hid), lambda bb, l: (bb, 0, 0)),
            scratch_shapes=[pltpu.VMEM((seq, hid), jnp.float32)]),
        compiler_params=pltpu.CompilerParams(
            dimension_semantics=("parallel", "arbitrary"),
            vmem_limit_bytes=VMEM_LIMIT),
    )(x0, attn_bias,
      params['wq'], params['bq'], params['wk'], params['bk'],
      params['wv'], params['bv'], params['wo'], params['bo'],
      params['ln1_g'], params['ln1_b'],
      params['w1'], params['b1'], params['w2'], params['b2'],
      params['ln2_g'], params['ln2_b'])


# ---------------------------------------------------------------------------
# Kernel 2: voxel-prediction Linear, tiled over the (padded) voxel axis
# ---------------------------------------------------------------------------
def _cls_linear_kernel(cls_ref, w_ref, b_ref, out_ref):
    y = jnp.dot(cls_ref[...].astype(jnp.bfloat16), w_ref[...],
                preferred_element_type=jnp.float32)
    out_ref[...] = y + b_ref[...]


def cls_linear(cls_vec, w, b):
    bsz, hid = cls_vec.shape
    v_pad = w.shape[1]
    tile_v = V_TILE if v_pad % V_TILE == 0 else v_pad
    return pl.pallas_call(
        _cls_linear_kernel,
        out_shape=jax.ShapeDtypeStruct((bsz, v_pad), jnp.float32),
        grid_spec=pltpu.PrefetchScalarGridSpec(
            num_scalar_prefetch=0,
            grid=(v_pad // tile_v,),
            in_specs=[pl.BlockSpec((bsz, hid), lambda v: (0, 0)),
                      pl.BlockSpec((hid, tile_v), lambda v: (0, v)),
                      pl.BlockSpec((1, tile_v), lambda v: (0, v))],
            out_specs=pl.BlockSpec((bsz, tile_v), lambda v: (0, v))),
        compiler_params=pltpu.CompilerParams(
            dimension_semantics=("parallel",),
            vmem_limit_bytes=VMEM_LIMIT),
    )(cls_vec, w, b)


# ---------------------------------------------------------------------------
# Deterministic parameter init (bf16 matmul weights, f32 everything else)
# ---------------------------------------------------------------------------
def init_params(key):
    keys = iter(jax.random.split(key, 64))
    std = 0.02
    scale = 1.0 / math.sqrt(HD)          # folded into wq (and bq) at init

    def w_f32(shape):
        return (std * jax.random.normal(next(keys), shape)).astype(jnp.float32)

    def w_bf16(shape, mul=1.0):
        return (w_f32(shape) * mul).astype(jnp.bfloat16)

    # nn.Linear(768, num_voxels): weight (V, H) stored transposed as (H, V),
    # padded to a V_TILE multiple (padding sliced off in the forward pass).
    lin_w = jnp.pad(w_f32((H, NUM_VOXELS)),
                    ((0, 0), (0, V_PAD - NUM_VOXELS))).astype(jnp.bfloat16)

    params = {
        'word_emb': w_f32((VOCAB, H)),
        'pos_emb': w_f32((MAX_POS, H)),
        'type_emb': w_f32((2, H)),
        'emb_ln_g': jnp.ones((1, H), jnp.float32),
        'emb_ln_b': jnp.zeros((1, H), jnp.float32),
        # --- stacked encoder-layer parameters, leading axis = LAYERS ---
        # 1/sqrt(head_dim) pre-folded into the query projection (the bias is
        # zero here; pretrained bq would be scaled the same way).
        'wq': w_bf16((LAYERS, H, H), mul=scale),
        'bq': jnp.zeros((LAYERS, 1, H), jnp.float32),
        'wk': w_bf16((LAYERS, H, H)), 'bk': jnp.zeros((LAYERS, 1, H), jnp.float32),
        'wv': w_bf16((LAYERS, H, H)), 'bv': jnp.zeros((LAYERS, 1, H), jnp.float32),
        'wo': w_bf16((LAYERS, H, H)), 'bo': jnp.zeros((LAYERS, 1, H), jnp.float32),
        'ln1_g': jnp.ones((LAYERS, 1, H), jnp.float32),
        'ln1_b': jnp.zeros((LAYERS, 1, H), jnp.float32),
        'w1': w_bf16((LAYERS, H, FF)), 'b1': jnp.zeros((LAYERS, 1, FF), jnp.float32),
        'w2': w_bf16((LAYERS, FF, H)), 'b2': jnp.zeros((LAYERS, 1, H), jnp.float32),
        'ln2_g': jnp.ones((LAYERS, 1, H), jnp.float32),
        'ln2_b': jnp.zeros((LAYERS, 1, H), jnp.float32),
        'lin_w': lin_w,
        'lin_b': jnp.zeros((1, V_PAD), jnp.float32),
    }
    return params


# ---------------------------------------------------------------------------
# Full forward (glue: gathers / embedding LN / mask bias; hot path: 2 kernels)
# ---------------------------------------------------------------------------
def brain_biased_bert_forward(params, token_ids, attention_mask):
    bsz, seq = token_ids.shape
    # Embedding lookups (gather) in plain JAX glue.
    word = jnp.take(params['word_emb'], token_ids, axis=0)          # (B,S,H)
    pos = params['pos_emb'][:seq][None, :, :]                       # (1,S,H)
    typ = params['type_emb'][0][None, None, :]                      # (1,1,H)
    # TODO(synk): only token-type-0 embedding is used (single-segment inputs).
    summed = (word + pos + typ).astype(jnp.float32)

    # One-shot embedding LayerNorm done in the wrapper (keeps the pipelined
    # encoder body free of the extra inputs / cold init work).
    x0 = _layer_norm(summed, params['emb_ln_g'], params['emb_ln_b'])

    # HF-style extended additive attention mask, computed ONCE for all layers.
    attn_bias = ((1.0 - attention_mask.astype(jnp.float32))
                 * (-10000.0))[:, None, :]                          # (B,1,S)

    x = bert_encoder(x0, attn_bias, params)                         # (B,S,H)

    cls = x[:, 0, :]                                                # (B,H) only
    y = cls_linear(cls, params['lin_w'], params['lin_b'])           # (B,V_PAD)
    return y[:, :NUM_VOXELS]                                        # (B,V)


if __name__ == "__main__":
    key = jax.random.PRNGKey(0)
    k_param, k_ids = jax.random.split(key)

    params = init_params(k_param)

    token_ids = jax.random.randint(k_ids, (B, S), 0, VOCAB, dtype=jnp.int32)
    token_ids = token_ids.at[:, 0].set(1)          # pretend CLS id
    attention_mask = jnp.ones((B, S), jnp.int32)   # no padding in this example

    pred_fmri = brain_biased_bert_forward(params, token_ids, attention_mask)
    pred_fmri = jax.block_until_ready(pred_fmri)

    assert pred_fmri.shape == (B, NUM_VOXELS)
    assert pred_fmri.dtype == jnp.float32
    print("KERNEL_OK")
</pallas_src>

<mosaic_0001>
module attributes {stable_mosaic.version = 11 : i64} {
  func.func @_bert_encoder_kernel(%arg0: i32, %arg1: i32, %arg2: memref<1x8x32xf32, #tpu.memory_space<vmem>>, %arg3: memref<1x1x8xf32, #tpu.memory_space<vmem>>, %arg4: memref<1x32x32xbf16, #tpu.memory_space<vmem>>, %arg5: memref<1x1x32xf32, #tpu.memory_space<vmem>>, %arg6: memref<1x32x32xbf16, #tpu.memory_space<vmem>>, %arg7: memref<1x1x32xf32, #tpu.memory_space<vmem>>, %arg8: memref<1x32x32xbf16, #tpu.memory_space<vmem>>, %arg9: memref<1x1x32xf32, #tpu.memory_space<vmem>>, %arg10: memref<1x32x32xbf16, #tpu.memory_space<vmem>>, %arg11: memref<1x1x32xf32, #tpu.memory_space<vmem>>, %arg12: memref<1x1x32xf32, #tpu.memory_space<vmem>>, %arg13: memref<1x1x32xf32, #tpu.memory_space<vmem>>, %arg14: memref<1x32x128xbf16, #tpu.memory_space<vmem>>, %arg15: memref<1x1x128xf32, #tpu.memory_space<vmem>>, %arg16: memref<1x128x32xbf16, #tpu.memory_space<vmem>>, %arg17: memref<1x1x32xf32, #tpu.memory_space<vmem>>, %arg18: memref<1x1x32xf32, #tpu.memory_space<vmem>>, %arg19: memref<1x1x32xf32, #tpu.memory_space<vmem>>, %arg20: memref<1x8x32xf32, #tpu.memory_space<vmem>>, %arg21: memref<8x32xf32, #tpu.memory_space<vmem>>) attributes {dimension_semantics = [#tpu.dimension_semantics<parallel>, #tpu.dimension_semantics<arbitrary>], iteration_bounds = array<i64: 2, 2>, scalar_prefetch = 0 : i64, scratch_operands = 1 : i64, tpu.core_type = #tpu.core_type<tc>, window_params = [{transform_indices = @transform_0, window_bounds = array<i64: 1, 8, 32>}, {transform_indices = @transform_1, window_bounds = array<i64: 1, 1, 8>}, {transform_indices = @transform_2, window_bounds = array<i64: 1, 32, 32>}, {transform_indices = @transform_3, window_bounds = array<i64: 1, 1, 32>}, {transform_indices = @transform_4, window_bounds = array<i64: 1, 32, 32>}, {transform_indices = @transform_5, window_bounds = array<i64: 1, 1, 32>}, {transform_indices = @transform_6, window_bounds = array<i64: 1, 32, 32>}, {transform_indices = @transform_7, window_bounds = array<i64: 1, 1, 32>}, {transform_indices = @transform_8, window_bounds = array<i64: 1, 32, 32>}, {transform_indices = @transform_9, window_bounds = array<i64: 1, 1, 32>}, {transform_indices = @transform_10, window_bounds = array<i64: 1, 1, 32>}, {transform_indices = @transform_11, window_bounds = array<i64: 1, 1, 32>}, {transform_indices = @transform_12, window_bounds = array<i64: 1, 32, 128>}, {transform_indices = @transform_13, window_bounds = array<i64: 1, 1, 128>}, {transform_indices = @transform_14, window_bounds = array<i64: 1, 128, 32>}, {transform_indices = @transform_15, window_bounds = array<i64: 1, 1, 32>}, {transform_indices = @transform_16, window_bounds = array<i64: 1, 1, 32>}, {transform_indices = @transform_17, window_bounds = array<i64: 1, 1, 32>}, {transform_indices = @transform_18, window_bounds = array<i64: 1, 8, 32>}]} {
    %c0_i32 = arith.constant 0 : i32
    %0 = arith.cmpi eq, %arg1, %c0_i32 : i32
    %1 = arith.extui %0 : i1 to i32
    %c0_i32_0 = arith.constant 0 : i32
    %2 = arith.cmpi ne, %1, %c0_i32_0 : i32
    scf.if %2 {
      %c0_98 = arith.constant 0 : index
      %c0_99 = arith.constant 0 : index
      %c0_100 = arith.constant 0 : index
      %203 = vector.load %arg2[%c0_98, %c0_99, %c0_100] : memref<1x8x32xf32, #tpu.memory_space<vmem>>, vector<1x8x32xf32>
      %c0_101 = arith.constant 0 : index
      %c0_102 = arith.constant 0 : index
      %c0_103 = arith.constant 0 : index
      %204 = vector.load %arg20[%c0_101, %c0_102, %c0_103] : memref<1x8x32xf32, #tpu.memory_space<vmem>>, vector<1x8x32xf32>
      tpu.vector_store %arg20[%c0_101, %c0_102, %c0_103], %203 {strides = array<i32>} : memref<1x8x32xf32, #tpu.memory_space<vmem>>, vector<1x8x32xf32>,
    } else {
    }
    %c0_i32_1 = arith.constant 0 : i32
    %c1_i32 = arith.constant 1 : i32
    %3 = arith.muli %c0_i32_1, %c1_i32 : i32
    %c0_i32_2 = arith.constant 0 : i32
    %4 = arith.addi %c0_i32_2, %3 : i32
    %5 = arith.index_cast %4 : i32 to index
    %c0 = arith.constant 0 : index
    %c0_3 = arith.constant 0 : index
    %6 = vector.load %arg20[%5, %c0, %c0_3] : memref<1x8x32xf32, #tpu.memory_space<vmem>>, vector<1x8x32xf32>
    %7 = vector.shape_cast %6 : vector<1x8x32xf32> to vector<8x32xf32>
    %8 = arith.truncf %7 : vector<8x32xf32> to vector<8x32xbf16>
    %c0_4 = arith.constant 0 : index
    %c0_5 = arith.constant 0 : index
    %c0_6 = arith.constant 0 : index
    %9 = vector.load %arg4[%c0_4, %c0_5, %c0_6] : memref<1x32x32xbf16, #tpu.memory_space<vmem>>, vector<1x32x32xbf16>
    %10 = vector.shape_cast %9 : vector<1x32x32xbf16> to vector<32x32xbf16>
    %cst = arith.constant dense<0.000000e+00> : vector<8x32xf32>
    %11 = tpu.matmul %8, %10, %cst {dimension_numbers = #tpu.dot_dimension_numbers<[1], [0], [0], [1], [0, 0, 1, 1], [], []>} : vector<8x32xbf16>, vector<32x32xbf16>, vector<8x32xf32> -> vector<8x32xf32>
    %c0_7 = arith.constant 0 : index
    %c0_8 = arith.constant 0 : index
    %c0_9 = arith.constant 0 : index
    %12 = vector.load %arg5[%c0_7, %c0_8, %c0_9] : memref<1x1x32xf32, #tpu.memory_space<vmem>>, vector<1x1x32xf32>
    %13 = vector.shape_cast %12 : vector<1x1x32xf32> to vector<1x32xf32>
    %14 = vector.broadcast %13 : vector<1x32xf32> to vector<8x32xf32>
    %15 = arith.addf %11, %14 : vector<8x32xf32>
    %c0_10 = arith.constant 0 : index
    %c0_11 = arith.constant 0 : index
    %c0_12 = arith.constant 0 : index
    %16 = vector.load %arg6[%c0_10, %c0_11, %c0_12] : memref<1x32x32xbf16, #tpu.memory_space<vmem>>, vector<1x32x32xbf16>
    %17 = vector.shape_cast %16 : vector<1x32x32xbf16> to vector<32x32xbf16>
    %cst_13 = arith.constant dense<0.000000e+00> : vector<8x32xf32>
    %18 = tpu.matmul %8, %17, %cst_13 {dimension_numbers = #tpu.dot_dimension_numbers<[1], [0], [0], [1], [0, 0, 1, 1], [], []>} : vector<8x32xbf16>, vector<32x32xbf16>, vector<8x32xf32> -> vector<8x32xf32>
    %c0_14 = arith.constant 0 : index
    %c0_15 = arith.constant 0 : index
    %c0_16 = arith.constant 0 : index
    %19 = vector.load %arg7[%c0_14, %c0_15, %c0_16] : memref<1x1x32xf32, #tpu.memory_space<vmem>>, vector<1x1x32xf32>
    %20 = vector.shape_cast %19 : vector<1x1x32xf32> to vector<1x32xf32>
    %21 = vector.broadcast %20 : vector<1x32xf32> to vector<8x32xf32>
    %22 = arith.addf %18, %21 : vector<8x32xf32>
    %c0_17 = arith.constant 0 : index
    %c0_18 = arith.constant 0 : index
    %c0_19 = arith.constant 0 : index
    %23 = vector.load %arg8[%c0_17, %c0_18, %c0_19] : memref<1x32x32xbf16, #tpu.memory_space<vmem>>, vector<1x32x32xbf16>
    %24 = vector.shape_cast %23 : vector<1x32x32xbf16> to vector<32x32xbf16>
    %cst_20 = arith.constant dense<0.000000e+00> : vector<8x32xf32>
    %25 = tpu.matmul %8, %24, %cst_20 {dimension_numbers = #tpu.dot_dimension_numbers<[1], [0], [0], [1], [0, 0, 1, 1], [], []>} : vector<8x32xbf16>, vector<32x32xbf16>, vector<8x32xf32> -> vector<8x32xf32>
    %c0_21 = arith.constant 0 : index
    %c0_22 = arith.constant 0 : index
    %c0_23 = arith.constant 0 : index
    %26 = vector.load %arg9[%c0_21, %c0_22, %c0_23] : memref<1x1x32xf32, #tpu.memory_space<vmem>>, vector<1x1x32xf32>
    %27 = vector.shape_cast %26 : vector<1x1x32xf32> to vector<1x32xf32>
    %28 = vector.broadcast %27 : vector<1x32xf32> to vector<8x32xf32>
    %29 = arith.addf %25, %28 : vector<8x32xf32>
    %30 = arith.truncf %15 : vector<8x32xf32> to vector<8x32xbf16>
    %31 = arith.truncf %22 : vector<8x32xf32> to vector<8x32xbf16>
    %32 = arith.truncf %29 : vector<8x32xf32> to vector<8x32xbf16>
    %33 = arith.index_cast %4 : i32 to index
    %c0_24 = arith.constant 0 : index
    %c0_25 = arith.constant 0 : index
    %34 = vector.load %arg3[%33, %c0_24, %c0_25] : memref<1x1x8xf32, #tpu.memory_space<vmem>>, vector<1x1x8xf32>
    %35 = vector.shape_cast %34 : vector<1x1x8xf32> to vector<1x8xf32>
    %36 = vector.extract_strided_slice %30 {offsets = [0, 0], sizes = [8, 8], strides = [1, 1]} : vector<8x32xbf16> to vector<8x8xbf16>
    %37 = vector.extract_strided_slice %31 {offsets = [0, 0], sizes = [8, 8], strides = [1, 1]} : vector<8x32xbf16> to vector<8x8xbf16>
    "tpu.trace_start"() <{level = 10 : i32, message = "qd,kd->qk"}> : () -> ()
    %cst_26 = arith.constant dense<0.000000e+00> : vector<8x8xf32>
    %38 = tpu.matmul %36, %37, %cst_26 {dimension_numbers = #tpu.dot_dimension_numbers<[1], [1], [0], [0], [0, 0, 1, 0], [], []>} : vector<8x8xbf16>, vector<8x8xbf16>, vector<8x8xf32> -> vector<8x8xf32>
    "tpu.trace_stop"() : () -> ()
    %39 = vector.broadcast %35 : vector<1x8xf32> to vector<8x8xf32>
    %40 = arith.addf %38, %39 : vector<8x8xf32>
    %cst_27 = arith.constant dense<0xFF800000> : vector<8xf32>
    %41 = vector.multi_reduction <maximumf>, %40, %cst_27 [1] : vector<8x8xf32> to vector<8xf32>
    %42 = vector.shape_cast %41 : vector<8xf32> to vector<8x1xf32>
    %43 = vector.broadcast %42 : vector<8x1xf32> to vector<8x8xf32>
    %44 = arith.subf %40, %43 : vector<8x8xf32>
    %45 = math.exp %44 : vector<8x8xf32>
    %cst_28 = arith.constant dense<0.000000e+00> : vector<8xf32>
    %46 = vector.multi_reduction <add>, %45, %cst_28 [1] : vector<8x8xf32> to vector<8xf32>
    %47 = vector.shape_cast %46 : vector<8xf32> to vector<8x1xf32>
    %48 = tpu.reciprocal %47 {approx = true} : vector<8x1xf32> -> vector<8x1xf32>
    %49 = vector.broadcast %48 : vector<8x1xf32> to vector<8x8xf32>
    %50 = arith.mulf %45, %49 : vector<8x8xf32>
    %51 = arith.truncf %50 : vector<8x8xf32> to vector<8x8xbf16>
    %52 = vector.extract_strided_slice %32 {offsets = [0, 0], sizes = [8, 8], strides = [1, 1]} : vector<8x32xbf16> to vector<8x8xbf16>
    "tpu.trace_start"() <{level = 10 : i32, message = "qk,kd->qd"}> : () -> ()
    %cst_29 = arith.constant dense<0.000000e+00> : vector<8x8xf32>
    %53 = tpu.matmul %51, %52, %cst_29 {dimension_numbers = #tpu.dot_dimension_numbers<[1], [0], [0], [1], [0, 0, 1, 1], [], []>} : vector<8x8xbf16>, vector<8x8xbf16>, vector<8x8xf32> -> vector<8x8xf32>
    "tpu.trace_stop"() : () -> ()
    %c0_30 = arith.constant 0 : index
    %c0_31 = arith.constant 0 : index
    %54 = vector.load %arg21[%c0_30, %c0_31] : memref<8x32xf32, #tpu.memory_space<vmem>>, vector<8x8xf32>
    tpu.vector_store %arg21[%c0_30, %c0_31], %53 {strides = array<i32>} : memref<8x32xf32, #tpu.memory_space<vmem>>, vector<8x8xf32>,
    %55 = vector.extract_strided_slice %30 {offsets = [0, 8], sizes = [8, 8], strides = [1, 1]} : vector<8x32xbf16> to vector<8x8xbf16>
    %56 = vector.extract_strided_slice %31 {offsets = [0, 8], sizes = [8, 8], strides = [1, 1]} : vector<8x32xbf16> to vector<8x8xbf16>
    "tpu.trace_start"() <{level = 10 : i32, message = "qd,kd->qk"}> : () -> ()
    %cst_32 = arith.constant dense<0.000000e+00> : vector<8x8xf32>
    %57 = tpu.matmul %55, %56, %cst_32 {dimension_numbers = #tpu.dot_dimension_numbers<[1], [1], [0], [0], [0, 0, 1, 0], [], []>} : vector<8x8xbf16>, vector<8x8xbf16>, vector<8x8xf32> -> vector<8x8xf32>
    "tpu.trace_stop"() : () -> ()
    %58 = vector.broadcast %35 : vector<1x8xf32> to vector<8x8xf32>
    %59 = arith.addf %57, %58 : vector<8x8xf32>
    %cst_33 = arith.constant dense<0xFF800000> : vector<8xf32>
    %60 = vector.multi_reduction <maximumf>, %59, %cst_33 [1] : vector<8x8xf32> to vector<8xf32>
    %61 = vector.shape_cast %60 : vector<8xf32> to vector<8x1xf32>
    %62 = vector.broadcast %61 : vector<8x1xf32> to vector<8x8xf32>
    %63 = arith.subf %59, %62 : vector<8x8xf32>
    %64 = math.exp %63 : vector<8x8xf32>
    %cst_34 = arith.constant dense<0.000000e+00> : vector<8xf32>
    %65 = vector.multi_reduction <add>, %64, %cst_34 [1] : vector<8x8xf32> to vector<8xf32>
    %66 = vector.shape_cast %65 : vector<8xf32> to vector<8x1xf32>
    %67 = tpu.reciprocal %66 {approx = true} : vector<8x1xf32> -> vector<8x1xf32>
    %68 = vector.broadcast %67 : vector<8x1xf32> to vector<8x8xf32>
    %69 = arith.mulf %64, %68 : vector<8x8xf32>
    %70 = arith.truncf %69 : vector<8x8xf32> to vector<8x8xbf16>
    %71 = vector.extract_strided_slice %32 {offsets = [0, 8], sizes = [8, 8], strides = [1, 1]} : vector<8x32xbf16> to vector<8x8xbf16>
    "tpu.trace_start"() <{level = 10 : i32, message = "qk,kd->qd"}> : () -> ()
    %cst_35 = arith.constant dense<0.000000e+00> : vector<8x8xf32>
    %72 = tpu.matmul %70, %71, %cst_35 {dimension_numbers = #tpu.dot_dimension_numbers<[1], [0], [0], [1], [0, 0, 1, 1], [], []>} : vector<8x8xbf16>, vector<8x8xbf16>, vector<8x8xf32> -> vector<8x8xf32>
    "tpu.trace_stop"() : () -> ()
    %c0_36 = arith.constant 0 : index
    %c8 = arith.constant 8 : index
    %73 = vector.load %arg21[%c0_36, %c8] : memref<8x32xf32, #tpu.memory_space<vmem>>, vector<8x8xf32>
    tpu.vector_store %arg21[%c0_36, %c8], %72 {strides = array<i32>} : memref<8x32xf32, #tpu.memory_space<vmem>>, vector<8x8xf32>,
    %74 = vector.extract_strided_slice %30 {offsets = [0, 16], sizes = [8, 8], strides = [1, 1]} : vector<8x32xbf16> to vector<8x8xbf16>
    %75 = vector.extract_strided_slice %31 {offsets = [0, 16], sizes = [8, 8], strides = [1, 1]} : vector<8x32xbf16> to vector<8x8xbf16>
    "tpu.trace_start"() <{level = 10 : i32, message = "qd,kd->qk"}> : () -> ()
    %cst_37 = arith.constant dense<0.000000e+00> : vector<8x8xf32>
    %76 = tpu.matmul %74, %75, %cst_37 {dimension_numbers = #tpu.dot_dimension_numbers<[1], [1], [0], [0], [0, 0, 1, 0], [], []>} : vector<8x8xbf16>, vector<8x8xbf16>, vector<8x8xf32> -> vector<8x8xf32>
    "tpu.trace_stop"() : () -> ()
    %77 = vector.broadcast %35 : vector<1x8xf32> to vector<8x8xf32>
    %78 = arith.addf %76, %77 : vector<8x8xf32>
    %cst_38 = arith.constant dense<0xFF800000> : vector<8xf32>
    %79 = vector.multi_reduction <maximumf>, %78, %cst_38 [1] : vector<8x8xf32> to vector<8xf32>
    %80 = vector.shape_cast %79 : vector<8xf32> to vector<8x1xf32>
    %81 = vector.broadcast %80 : vector<8x1xf32> to vector<8x8xf32>
    %82 = arith.subf %78, %81 : vector<8x8xf32>
    %83 = math.exp %82 : vector<8x8xf32>
    %cst_39 = arith.constant dense<0.000000e+00> : vector<8xf32>
    %84 = vector.multi_reduction <add>, %83, %cst_39 [1] : vector<8x8xf32> to vector<8xf32>
    %85 = vector.shape_cast %84 : vector<8xf32> to vector<8x1xf32>
    %86 = tpu.reciprocal %85 {approx = true} : vector<8x1xf32> -> vector<8x1xf32>
    %87 = vector.broadcast %86 : vector<8x1xf32> to vector<8x8xf32>
    %88 = arith.mulf %83, %87 : vector<8x8xf32>
    %89 = arith.truncf %88 : vector<8x8xf32> to vector<8x8xbf16>
    %90 = vector.extract_strided_slice %32 {offsets = [0, 16], sizes = [8, 8], strides = [1, 1]} : vector<8x32xbf16> to vector<8x8xbf16>
    "tpu.trace_start"() <{level = 10 : i32, message = "qk,kd->qd"}> : () -> ()
    %cst_40 = arith.constant dense<0.000000e+00> : vector<8x8xf32>
    %91 = tpu.matmul %89, %90, %cst_40 {dimension_numbers = #tpu.dot_dimension_numbers<[1], [0], [0], [1], [0, 0, 1, 1], [], []>} : vector<8x8xbf16>, vector<8x8xbf16>, vector<8x8xf32> -> vector<8x8xf32>
    "tpu.trace_stop"() : () -> ()
    %c0_41 = arith.constant 0 : index
    %c16 = arith.constant 16 : index
    %92 = vector.load %arg21[%c0_41, %c16] : memref<8x32xf32, #tpu.memory_space<vmem>>, vector<8x8xf32>
    tpu.vector_store %arg21[%c0_41, %c16], %91 {strides = array<i32>} : memref<8x32xf32, #tpu.memory_space<vmem>>, vector<8x8xf32>,
    %93 = vector.extract_strided_slice %30 {offsets = [0, 24], sizes = [8, 8], strides = [1, 1]} : vector<8x32xbf16> to vector<8x8xbf16>
    %94 = vector.extract_strided_slice %31 {offsets = [0, 24], sizes = [8, 8], strides = [1, 1]} : vector<8x32xbf16> to vector<8x8xbf16>
    "tpu.trace_start"() <{level = 10 : i32, message = "qd,kd->qk"}> : () -> ()
    %cst_42 = arith.constant dense<0.000000e+00> : vector<8x8xf32>
    %95 = tpu.matmul %93, %94, %cst_42 {dimension_numbers = #tpu.dot_dimension_numbers<[1], [1], [0], [0], [0, 0, 1, 0], [], []>} : vector<8x8xbf16>, vector<8x8xbf16>, vector<8x8xf32> -> vector<8x8xf32>
    "tpu.trace_stop"() : () -> ()
    %96 = vector.broadcast %35 : vector<1x8xf32> to vector<8x8xf32>
    %97 = arith.addf %95, %96 : vector<8x8xf32>
    %cst_43 = arith.constant dense<0xFF800000> : vector<8xf32>
    %98 = vector.multi_reduction <maximumf>, %97, %cst_43 [1] : vector<8x8xf32> to vector<8xf32>
    %99 = vector.shape_cast %98 : vector<8xf32> to vector<8x1xf32>
    %100 = vector.broadcast %99 : vector<8x1xf32> to vector<8x8xf32>
    %101 = arith.subf %97, %100 : vector<8x8xf32>
    %102 = math.exp %101 : vector<8x8xf32>
    %cst_44 = arith.constant dense<0.000000e+00> : vector<8xf32>
    %103 = vector.multi_reduction <add>, %102, %cst_44 [1] : vector<8x8xf32> to vector<8xf32>
    %104 = vector.shape_cast %103 : vector<8xf32> to vector<8x1xf32>
    %105 = tpu.reciprocal %104 {approx = true} : vector<8x1xf32> -> vector<8x1xf32>
    %106 = vector.broadcast %105 : vector<8x1xf32> to vector<8x8xf32>
    %107 = arith.mulf %102, %106 : vector<8x8xf32>
    %108 = arith.truncf %107 : vector<8x8xf32> to vector<8x8xbf16>
    %109 = vector.extract_strided_slice %32 {offsets = [0, 24], sizes = [8, 8], strides = [1, 1]} : vector<8x32xbf16> to vector<8x8xbf16>
    "tpu.trace_start"() <{level = 10 : i32, message = "qk,kd->qd"}> : () -> ()
    %cst_45 = arith.constant dense<0.000000e+00> : vector<8x8xf32>
    %110 = tpu.matmul %108, %109, %cst_45 {dimension_numbers = #tpu.dot_dimension_numbers<[1], [0], [0], [1], [0, 0, 1, 1], [], []>} : vector<8x8xbf16>, vector<8x8xbf16>, vector<8x8xf32> -> vector<8x8xf32>
    "tpu.trace_stop"() : () -> ()
    %c0_46 = arith.constant 0 : index
    %c24 = arith.constant 24 : index
    %111 = vector.load %arg21[%c0_46, %c24] : memref<8x32xf32, #tpu.memory_space<vmem>>, vector<8x8xf32>
    tpu.vector_store %arg21[%c0_46, %c24], %110 {strides = array<i32>} : memref<8x32xf32, #tpu.memory_space<vmem>>, vector<8x8xf32>,
    %c0_47 = arith.constant 0 : index
    %c0_48 = arith.constant 0 : index
    %112 = vector.load %arg21[%c0_47, %c0_48] : memref<8x32xf32, #tpu.memory_space<vmem>>, vector<8x32xf32>
    %113 = arith.truncf %112 : vector<8x32xf32> to vector<8x32xbf16>
    %c0_49 = arith.constant 0 : index
    %c0_50 = arith.constant 0 : index
    %c0_51 = arith.constant 0 : index
    %114 = vector.load %arg10[%c0_49, %c0_50, %c0_51] : memref<1x32x32xbf16, #tpu.memory_space<vmem>>, vector<1x32x32xbf16>
    %115 = vector.shape_cast %114 : vector<1x32x32xbf16> to vector<32x32xbf16>
    %cst_52 = arith.constant dense<0.000000e+00> : vector<8x32xf32>
    %116 = tpu.matmul %113, %115, %cst_52 {dimension_numbers = #tpu.dot_dimension_numbers<[1], [0], [0], [1], [0, 0, 1, 1], [], []>} : vector<8x32xbf16>, vector<32x32xbf16>, vector<8x32xf32> -> vector<8x32xf32>
    %c0_53 = arith.constant 0 : index
    %c0_54 = arith.constant 0 : index
    %c0_55 = arith.constant 0 : index
    %117 = vector.load %arg11[%c0_53, %c0_54, %c0_55] : memref<1x1x32xf32, #tpu.memory_space<vmem>>, vector<1x1x32xf32>
    %118 = vector.shape_cast %117 : vector<1x1x32xf32> to vector<1x32xf32>
    %119 = vector.broadcast %118 : vector<1x32xf32> to vector<8x32xf32>
    %120 = arith.addf %116, %119 : vector<8x32xf32>
    %121 = arith.addf %7, %120 : vector<8x32xf32>
    %c0_56 = arith.constant 0 : index
    %c0_57 = arith.constant 0 : index
    %c0_58 = arith.constant 0 : index
    %122 = vector.load %arg12[%c0_56, %c0_57, %c0_58] : memref<1x1x32xf32, #tpu.memory_space<vmem>>, vector<1x1x32xf32>
    %123 = vector.shape_cast %122 : vector<1x1x32xf32> to vector<1x32xf32>
    %c0_59 = arith.constant 0 : index
    %c0_60 = arith.constant 0 : index
    %c0_61 = arith.constant 0 : index
    %124 = vector.load %arg13[%c0_59, %c0_60, %c0_61] : memref<1x1x32xf32, #tpu.memory_space<vmem>>, vector<1x1x32xf32>
    %125 = vector.shape_cast %124 : vector<1x1x32xf32> to vector<1x32xf32>
    %cst_62 = arith.constant dense<0.000000e+00> : vector<8xf32>
    %126 = vector.multi_reduction <add>, %121, %cst_62 [1] : vector<8x32xf32> to vector<8xf32>
    %127 = vector.shape_cast %126 : vector<8xf32> to vector<8x1xf32>
    %cst_63 = arith.constant 3.200000e+01 : f32
    %128 = vector.broadcast %cst_63 : f32 to vector<8x1xf32>
    %129 = arith.divf %127, %128 : vector<8x1xf32>
    %130 = vector.broadcast %129 : vector<8x1xf32> to vector<8x32xf32>
    %131 = arith.subf %121, %130 : vector<8x32xf32>
    %132 = arith.mulf %131, %131 : vector<8x32xf32>
    %cst_64 = arith.constant dense<0.000000e+00> : vector<8xf32>
    %133 = vector.multi_reduction <add>, %132, %cst_64 [1] : vector<8x32xf32> to vector<8xf32>
    %134 = vector.shape_cast %133 : vector<8xf32> to vector<8x1xf32>
    %cst_65 = arith.constant 3.200000e+01 : f32
    %135 = vector.broadcast %cst_65 : f32 to vector<8x1xf32>
    %136 = arith.divf %134, %135 : vector<8x1xf32>
    %137 = vector.broadcast %129 : vector<8x1xf32> to vector<8x32xf32>
    %138 = arith.subf %121, %137 : vector<8x32xf32>
    %cst_66 = arith.constant 9.99999996E-13 : f32
    %139 = vector.broadcast %cst_66 : f32 to vector<8x1xf32>
    %140 = arith.addf %136, %139 : vector<8x1xf32>
    %141 = math.rsqrt %140 : vector<8x1xf32>
    %142 = vector.broadcast %141 : vector<8x1xf32> to vector<8x32xf32>
    %143 = arith.mulf %138, %142 : vector<8x32xf32>
    %144 = vector.broadcast %123 : vector<1x32xf32> to vector<8x32xf32>
    %145 = arith.mulf %143, %144 : vector<8x32xf32>
    %146 = vector.broadcast %125 : vector<1x32xf32> to vector<8x32xf32>
    %147 = arith.addf %145, %146 : vector<8x32xf32>
    %148 = arith.truncf %147 : vector<8x32xf32> to vector<8x32xbf16>
    %c0_67 = arith.constant 0 : index
    %c0_68 = arith.constant 0 : index
    %c0_69 = arith.constant 0 : index
    %149 = vector.load %arg14[%c0_67, %c0_68, %c0_69] : memref<1x32x128xbf16, #tpu.memory_space<vmem>>, vector<1x32x128xbf16>
    %150 = vector.shape_cast %149 : vector<1x32x128xbf16> to vector<32x128xbf16>
    %cst_70 = arith.constant dense<0.000000e+00> : vector<8x128xf32>
    %151 = tpu.matmul %148, %150, %cst_70 {dimension_numbers = #tpu.dot_dimension_numbers<[1], [0], [0], [1], [0, 0, 1, 1], [], []>} : vector<8x32xbf16>, vector<32x128xbf16>, vector<8x128xf32> -> vector<8x128xf32>
    %c0_71 = arith.constant 0 : index
    %c0_72 = arith.constant 0 : index
    %c0_73 = arith.constant 0 : index
    %152 = vector.load %arg15[%c0_71, %c0_72, %c0_73] : memref<1x1x128xf32, #tpu.memory_space<vmem>>, vector<1x1x128xf32>
    %153 = vector.shape_cast %152 : vector<1x1x128xf32> to vector<1x128xf32>
    %154 = vector.broadcast %153 : vector<1x128xf32> to vector<8x128xf32>
    %155 = arith.addf %151, %154 : vector<8x128xf32>
    %cst_74 = arith.constant 5.000000e-01 : f32
    %156 = vector.broadcast %cst_74 : f32 to vector<8x128xf32>
    %157 = arith.mulf %156, %155 : vector<8x128xf32>
    %cst_75 = arith.constant 0.707106769 : f32
    %158 = vector.broadcast %cst_75 : f32 to vector<8x128xf32>
    %159 = arith.mulf %155, %158 : vector<8x128xf32>
    %160 = math.erf %159 : vector<8x128xf32>
    %cst_76 = arith.constant 1.000000e+00 : f32
    %161 = vector.broadcast %cst_76 : f32 to vector<8x128xf32>
    %162 = arith.addf %161, %160 : vector<8x128xf32>
    %163 = arith.mulf %157, %162 : vector<8x128xf32>
    %164 = arith.truncf %163 : vector<8x128xf32> to vector<8x128xbf16>
    %c0_77 = arith.constant 0 : index
    %c0_78 = arith.constant 0 : index
    %c0_79 = arith.constant 0 : index
    %165 = vector.load %arg16[%c0_77, %c0_78, %c0_79] : memref<1x128x32xbf16, #tpu.memory_space<vmem>>, vector<1x128x32xbf16>
    %166 = vector.shape_cast %165 : vector<1x128x32xbf16> to vector<128x32xbf16>
    %cst_80 = arith.constant dense<0.000000e+00> : vector<8x32xf32>
    %167 = tpu.matmul %164, %166, %cst_80 {dimension_numbers = #tpu.dot_dimension_numbers<[1], [0], [0], [1], [0, 0, 1, 1], [], []>} : vector<8x128xbf16>, vector<128x32xbf16>, vector<8x32xf32> -> vector<8x32xf32>
    %c0_81 = arith.constant 0 : index
    %c0_82 = arith.constant 0 : index
    %c0_83 = arith.constant 0 : index
    %168 = vector.load %arg17[%c0_81, %c0_82, %c0_83] : memref<1x1x32xf32, #tpu.memory_space<vmem>>, vector<1x1x32xf32>
    %169 = vector.shape_cast %168 : vector<1x1x32xf32> to vector<1x32xf32>
    %170 = vector.broadcast %169 : vector<1x32xf32> to vector<8x32xf32>
    %171 = arith.addf %167, %170 : vector<8x32xf32>
    %172 = arith.addf %147, %171 : vector<8x32xf32>
    %c0_84 = arith.constant 0 : index
    %c0_85 = arith.constant 0 : index
    %c0_86 = arith.constant 0 : index
    %173 = vector.load %arg18[%c0_84, %c0_85, %c0_86] : memref<1x1x32xf32, #tpu.memory_space<vmem>>, vector<1x1x32xf32>
    %174 = vector.shape_cast %173 : vector<1x1x32xf32> to vector<1x32xf32>
    %c0_87 = arith.constant 0 : index
    %c0_88 = arith.constant 0 : index
    %c0_89 = arith.constant 0 : index
    %175 = vector.load %arg19[%c0_87, %c0_88, %c0_89] : memref<1x1x32xf32, #tpu.memory_space<vmem>>, vector<1x1x32xf32>
    %176 = vector.shape_cast %175 : vector<1x1x32xf32> to vector<1x32xf32>
    %cst_90 = arith.constant dense<0.000000e+00> : vector<8xf32>
    %177 = vector.multi_reduction <add>, %172, %cst_90 [1] : vector<8x32xf32> to vector<8xf32>
    %178 = vector.shape_cast %177 : vector<8xf32> to vector<8x1xf32>
    %cst_91 = arith.constant 3.200000e+01 : f32
    %179 = vector.broadcast %cst_91 : f32 to vector<8x1xf32>
    %180 = arith.divf %178, %179 : vector<8x1xf32>
    %181 = vector.broadcast %180 : vector<8x1xf32> to vector<8x32xf32>
    %182 = arith.subf %172, %181 : vector<8x32xf32>
    %183 = arith.mulf %182, %182 : vector<8x32xf32>
    %cst_92 = arith.constant dense<0.000000e+00> : vector<8xf32>
    %184 = vector.multi_reduction <add>, %183, %cst_92 [1] : vector<8x32xf32> to vector<8xf32>
    %185 = vector.shape_cast %184 : vector<8xf32> to vector<8x1xf32>
    %cst_93 = arith.constant 3.200000e+01 : f32
    %186 = vector.broadcast %cst_93 : f32 to vector<8x1xf32>
    %187 = arith.divf %185, %186 : vector<8x1xf32>
    %188 = vector.broadcast %180 : vector<8x1xf32> to vector<8x32xf32>
    %189 = arith.subf %172, %188 : vector<8x32xf32>
    %cst_94 = arith.constant 9.99999996E-13 : f32
    %190 = vector.broadcast %cst_94 : f32 to vector<8x1xf32>
    %191 = arith.addf %187, %190 : vector<8x1xf32>
    %192 = math.rsqrt %191 : vector<8x1xf32>
    %193 = vector.broadcast %192 : vector<8x1xf32> to vector<8x32xf32>
    %194 = arith.mulf %189, %193 : vector<8x32xf32>
    %195 = vector.broadcast %174 : vector<1x32xf32> to vector<8x32xf32>
    %196 = arith.mulf %194, %195 : vector<8x32xf32>
    %197 = vector.broadcast %176 : vector<1x32xf32> to vector<8x32xf32>
    %198 = arith.addf %196, %197 : vector<8x32xf32>
    %199 = arith.index_cast %4 : i32 to index
    %c0_95 = arith.constant 0 : index
    %c0_96 = arith.constant 0 : index
    %200 = vector.load %arg20[%199, %c0_95, %c0_96] : memref<1x8x32xf32, #tpu.memory_space<vmem>>, vector<1x8x32xf32>
    %201 = vector.shape_cast %200 : vector<1x8x32xf32> to vector<8x32xf32>
    %202 = vector.shape_cast %198 : vector<8x32xf32> to vector<1x8x32xf32>
    tpu.vector_store %arg20[%199, %c0_95, %c0_96], %202 {strides = array<i32>} : memref<1x8x32xf32, #tpu.memory_space<vmem>>, vector<1x8x32xf32>,
    %c1_i32_97 = arith.constant 1 : i32
    return
  }
  func.func @transform_0(%arg0: i32, %arg1: i32) -> (i32, i32, i32) {
    %c0_i32 = arith.constant 0 : i32
    %c0_i32_0 = arith.constant 0 : i32
    %c0_i32_1 = arith.constant 0 : i32
    return %arg0, %c0_i32, %c0_i32_0 : i32, i32, i32
  }
  func.func @transform_1(%arg0: i32, %arg1: i32) -> (i32, i32, i32) {
    %c0_i32 = arith.constant 0 : i32
    %c0_i32_0 = arith.constant 0 : i32
    %c0_i32_1 = arith.constant 0 : i32
    return %arg0, %c0_i32, %c0_i32_0 : i32, i32, i32
  }
  func.func @transform_2(%arg0: i32, %arg1: i32) -> (i32, i32, i32) {
    %c0_i32 = arith.constant 0 : i32
    %c0_i32_0 = arith.constant 0 : i32
    %c0_i32_1 = arith.constant 0 : i32
    return %arg1, %c0_i32, %c0_i32_0 : i32, i32, i32
  }
  func.func @transform_3(%arg0: i32, %arg1: i32) -> (i32, i32, i32) {
    %c0_i32 = arith.constant 0 : i32
    %c0_i32_0 = arith.constant 0 : i32
    %c0_i32_1 = arith.constant 0 : i32
    return %arg1, %c0_i32, %c0_i32_0 : i32, i32, i32
  }
  func.func @transform_4(%arg0: i32, %arg1: i32) -> (i32, i32, i32) {
    %c0_i32 = arith.constant 0 : i32
    %c0_i32_0 = arith.constant 0 : i32
    %c0_i32_1 = arith.constant 0 : i32
    return %arg1, %c0_i32, %c0_i32_0 : i32, i32, i32
  }
  func.func @transform_5(%arg0: i32, %arg1: i32) -> (i32, i32, i32) {
    %c0_i32 = arith.constant 0 : i32
    %c0_i32_0 = arith.constant 0 : i32
    %c0_i32_1 = arith.constant 0 : i32
    return %arg1, %c0_i32, %c0_i32_0 : i32, i32, i32
  }
  func.func @transform_6(%arg0: i32, %arg1: i32) -> (i32, i32, i32) {
    %c0_i32 = arith.constant 0 : i32
    %c0_i32_0 = arith.constant 0 : i32
    %c0_i32_1 = arith.constant 0 : i32
    return %arg1, %c0_i32, %c0_i32_0 : i32, i32, i32
  }
  func.func @transform_7(%arg0: i32, %arg1: i32) -> (i32, i32, i32) {
    %c0_i32 = arith.constant 0 : i32
    %c0_i32_0 = arith.constant 0 : i32
    %c0_i32_1 = arith.constant 0 : i32
    return %arg1, %c0_i32, %c0_i32_0 : i32, i32, i32
  }
  func.func @transform_8(%arg0: i32, %arg1: i32) -> (i32, i32, i32) {
    %c0_i32 = arith.constant 0 : i32
    %c0_i32_0 = arith.constant 0 : i32
    %c0_i32_1 = arith.constant 0 : i32
    return %arg1, %c0_i32, %c0_i32_0 : i32, i32, i32
  }
  func.func @transform_9(%arg0: i32, %arg1: i32) -> (i32, i32, i32) {
    %c0_i32 = arith.constant 0 : i32
    %c0_i32_0 = arith.constant 0 : i32
    %c0_i32_1 = arith.constant 0 : i32
    return %arg1, %c0_i32, %c0_i32_0 : i32, i32, i32
  }
  func.func @transform_10(%arg0: i32, %arg1: i32) -> (i32, i32, i32) {
    %c0_i32 = arith.constant 0 : i32
    %c0_i32_0 = arith.constant 0 : i32
    %c0_i32_1 = arith.constant 0 : i32
    return %arg1, %c0_i32, %c0_i32_0 : i32, i32, i32
  }
  func.func @transform_11(%arg0: i32, %arg1: i32) -> (i32, i32, i32) {
    %c0_i32 = arith.constant 0 : i32
    %c0_i32_0 = arith.constant 0 : i32
    %c0_i32_1 = arith.constant 0 : i32
    return %arg1, %c0_i32, %c0_i32_0 : i32, i32, i32
  }
  func.func @transform_12(%arg0: i32, %arg1: i32) -> (i32, i32, i32) {
    %c0_i32 = arith.constant 0 : i32
    %c0_i32_0 = arith.constant 0 : i32
    %c0_i32_1 = arith.constant 0 : i32
    return %arg1, %c0_i32, %c0_i32_0 : i32, i32, i32
  }
  func.func @transform_13(%arg0: i32, %arg1: i32) -> (i32, i32, i32) {
    %c0_i32 = arith.constant 0 : i32
    %c0_i32_0 = arith.constant 0 : i32
    %c0_i32_1 = arith.constant 0 : i32
    return %arg1, %c0_i32, %c0_i32_0 : i32, i32, i32
  }
  func.func @transform_14(%arg0: i32, %arg1: i32) -> (i32, i32, i32) {
    %c0_i32 = arith.constant 0 : i32
    %c0_i32_0 = arith.constant 0 : i32
    %c0_i32_1 = arith.constant 0 : i32
    return %arg1, %c0_i32, %c0_i32_0 : i32, i32, i32
  }
  func.func @transform_15(%arg0: i32, %arg1: i32) -> (i32, i32, i32) {
    %c0_i32 = arith.constant 0 : i32
    %c0_i32_0 = arith.constant 0 : i32
    %c0_i32_1 = arith.constant 0 : i32
    return %arg1, %c0_i32, %c0_i32_0 : i32, i32, i32
  }
  func.func @transform_16(%arg0: i32, %arg1: i32) -> (i32, i32, i32) {
    %c0_i32 = arith.constant 0 : i32
    %c0_i32_0 = arith.constant 0 : i32
    %c0_i32_1 = arith.constant 0 : i32
    return %arg1, %c0_i32, %c0_i32_0 : i32, i32, i32
  }
  func.func @transform_17(%arg0: i32, %arg1: i32) -> (i32, i32, i32) {
    %c0_i32 = arith.constant 0 : i32
    %c0_i32_0 = arith.constant 0 : i32
    %c0_i32_1 = arith.constant 0 : i32
    return %arg1, %c0_i32, %c0_i32_0 : i32, i32, i32
  }
  func.func @transform_18(%arg0: i32, %arg1: i32) -> (i32, i32, i32) {
    %c0_i32 = arith.constant 0 : i32
    %c0_i32_0 = arith.constant 0 : i32
    %c0_i32_1 = arith.constant 0 : i32
    return %arg0, %c0_i32, %c0_i32_0 : i32, i32, i32
  }
}

</mosaic_0001>

<bundles_post_ra>
// kernel: tpu_custom_call.1
= control target key start
LH: loop header
LB: loop body
LE: loop exit
PB: predicated region body
PF: predicated region fallthrough
CT: control target
= control target key end

     0   :  { %s3164_s0 = inlined_call_operand.hbm [shape: f32[2,8,32], index: 0, kind: input, shape index: {}]   ;;  %s3165_s1 = inlined_call_operand.vmem [shape: f32[2,1,8], index: 1, kind: input, shape index: {}]   ;;  %s3166_s2 = inlined_call_operand.vmem [shape: bf16[2,32,32], index: 2, kind: input, shape index: {}]   ;;  %s3167_s3 = inlined_call_operand.vmem [shape: f32[2,1,32], index: 3, kind: input, shape index: {}]   ;;  %s3168_s4 = inlined_call_operand.vmem [shape: bf16[2,32,32], index: 4, kind: input, shape index: {}]   ;;  %s3169_s5 = inlined_call_operand.vmem [shape: f32[2,1,32], index: 5, kind: input, shape index: {}]   ;;  %s3170_s6 = inlined_call_operand.vmem [shape: bf16[2,32,32], index: 6, kind: input, shape index: {}]   ;;  %s3171_s7 = inlined_call_operand.vmem [shape: f32[2,1,32], index: 7, kind: input, shape index: {}]   ;;  %s3172_s8 = inlined_call_operand.vmem [shape: bf16[2,32,32], index: 8, kind: input, shape index: {}]   ;;  %s3173_s9 = inlined_call_operand.vmem [shape: f32[2,1,32], index: 9, kind: input, shape index: {}]   ;;  %s3174_s10 = inlined_call_operand.vmem [shape: f32[2,1,32], index: 10, kind: input, shape index: {}]   ;;  %s3175_s11 = inlined_call_operand.vmem [shape: f32[2,1,32], index: 11, kind: input, shape index: {}]   ;;  %s3176_s12 = inlined_call_operand.vmem [shape: bf16[2,32,128], index: 12, kind: input, shape index: {}]   ;;  %s3177_s13 = inlined_call_operand.vmem [shape: f32[2,1,128], index: 13, kind: input, shape index: {}]   ;;  %s3178_s14 = inlined_call_operand.vmem [shape: bf16[2,128,32], index: 14, kind: input, shape index: {}]   ;;  %s3179_s15 = inlined_call_operand.vmem [shape: f32[2,1,32], index: 15, kind: input, shape index: {}]   ;;  %s3180_s16 = inlined_call_operand.vmem [shape: f32[2,1,32], index: 16, kind: input, shape index: {}]   ;;  %s3181_s17 = inlined_call_operand.vmem [shape: f32[2,1,32], index: 17, kind: input, shape index: {}]   ;;  %s3182_s18 = inlined_call_operand.hbm [shape: f32[2,8,32], index: 18, kind: output, shape index: {}]  }
   0x1   :  { %3203 = sst [smem:[#allocation25_spill]] %s3164_s0 }
   0x2   :  { %3204 = sst [smem:[#allocation26_spill]] %s3165_s1 }
   0x3   :  { %3205 = sst [smem:[#allocation27_spill]] %s3166_s2 }
   0x4   :  { %3206 = sst [smem:[#allocation28_spill]] %s3168_s4 }
   0x5   :  { %3207 = sst [smem:[#allocation29_spill]] %s3170_s6 }
   0x6   :  { %3208 = sst [smem:[#allocation30_spill]] %s3172_s8 }
   0x7   :  { %3209 = sst [smem:[#allocation31_spill]] %s3173_s9 }
   0x8   :  { %3210 = sst [smem:[#allocation32_spill]] %s3174_s10 }
   0x9   :  { %3211 = sst [smem:[#allocation33_spill]] %s3175_s11 }
   0xa   :  { %3212 = sst [smem:[#allocation34_spill]] %s3176_s12 }
   0xb   :  { %3213 = sst [smem:[#allocation35_spill]] %s3177_s13 }
   0xc   :  { %3214 = sst [smem:[#allocation36_spill]] %s3178_s14 }
   0xd   :  { %3215 = sst [smem:[#allocation37_spill]] %s3179_s15 }
   0xe   :  { %3216 = sst [smem:[#allocation38_spill]] %s3180_s16 }
   0xf   :  { %3217 = sst [smem:[#allocation39_spill]] %s3181_s17 }
  0x10   :  { %3218 = sst [smem:[#allocation40_spill]] %s3182_s18 }
  0x11   :  { %23 = vsyncpa [#allocation4], 0 }
  0x12   :  { %25 = vsyncpa [#allocation4 + $0x1], 0 }
  0x13   :  { %26 = vsyncpa [#allocation5], 0 }
  0x14   :  { %28 = vsyncpa [#allocation5 + $0x1], 0  ;;  %s2711_s27 = smov 0   ;;  %s2713_s28 = smov 0  }
  0x15   :  { %s2715_s29 = smov 0   ;;  %s2717_s30 = smov 0  }
  0x16   :  { %s2719_s0 = smov 0   ;;  %s2721_s19 = smov 0  }
  0x17   :  { %s2723_s1 = smov 0   ;;  %s2725_s20 = smov 0  }
  0x18 LB: > { %3219 = sst [smem:[#allocation9_spill]] %s2576_s27  ;;  %s2128_s21 = sadd.s32 4294967295, %s2604_s20   ;;  %s2604_s20 = sphi %s2725_s20, %s34_s20   ;;  %s2600_s1 = sphi %s2723_s1, %s3290_s1   ;;  %s2596_s19 = sphi %s2721_s19, %s3289_s19   ;;  %s2592_s0 = sphi %s2719_s0, %s3288_s0   ;;  %s2588_s30 = sphi %s2717_s30, %s3287_s30   ;;  %s2584_s29 = sphi %s2715_s29, %s3286_s29   ;;  %s2580_s28 = sphi %s2713_s28, %s3285_s28   ;;  %s2576_s27 = sphi %s2711_s27, %s3284_s27  }
  0x19   : > { %3220 = sst [smem:[#allocation10_spill]] %s2580_s28  ;;  %s2129_s22 = sadd.s32 4294967294, %s2604_s20  }
  0x1a   : > { %3221 = sst [smem:[#allocation11_spill]] %s2584_s29  ;;  %s43_s2 = sadd.s32 1, %s2596_s19 }
  0x1b   : > { %3222 = sst [smem:[#allocation12_spill]] %s2592_s0  ;;  %s46_s23 = sadd.s32 1, %s2600_s1 }
  0x1c   : > { %3223 = sst [smem:[#allocation13_spill]] %s2596_s19  ;;  %p44_p0 = scmp.ge.s32.totalorder %s43_s2, 2 }
  0x1d   : > { %3224 = sst [smem:[#allocation14_spill]] %s2600_s1  ;;  %s53_s24 = sadd.s32 1, %s2584_s29 }
  0x1e   : > { %3225 = sst [smem:[#allocation15_spill]] %s2604_s20  ;;  %p60_p1 = scmp.ne.s32.totalorder %s2584_s29, %s2580_s28 }
  0x1f   : > { %p61_p2 = scmp.eq.s32.totalorder %s2604_s20, 0  ;;  %s3292_s2 = smov (%p44_p0, %s43_s2), 0 }
  0x20   : > { %3226 = sst [smem:[#allocation16_spill]] %s3292_s2  ;;  %s3294_s23 = smov (!%p44_p0, %s46_s23), %s2600_s1 }
  0x21   : > { %p2762_p3 = por %p61_p2, %p60_p1  ;;  %p66_p4 = scmp.ne.s32.totalorder %s2580_s28, %s2576_s27 }
  0x22   : > { %p48_p5 = scmp.ge.s32.totalorder %s3294_s23, 2  ;;  %p67_p6 = scmp.eq.s32.totalorder %s2128_s21, 0 }
  0x23   : > { %p532_p7 = scmp.eq.s32.totalorder %s2128_s21, 3  ;;  %p538_p8 = scmp.eq.s32.totalorder %s2129_s22, 3 }
  0x24   : > { %s3296_s23 = smov (%p48_p5, %s3294_s23), 0  ;;  %p2770_p9 = por %p67_p6, %p66_p4 }
  0x25   : > { %3228 = sst [smem:[#allocation17_spill]] %s3296_s23  ;;  %p2774_p10 = por %p532_p7, %p60_p1 }
  0x26   : > { %s50_s19 = ssub.s32 %s2600_s1, %s3296_s23  ;;  %p2780_p11 = por %p538_p8, %p66_p4 }
  0x27   : > { %s3230_s2 = scalar_select %p2774_p10, 1, 0 }
  0x28   : > { %s3232_s27 = scalar_select %p2780_p11, 1, 0 }
  0x29   : > { %3231 = sst [smem:[#allocation18_spill]] %s3230_s2  ;;  %p51_p12 = scmp.eq.s32.totalorder %s50_s19, 0 }
  0x2a   : > { %3233 = sst [smem:[#allocation19_spill]] %s3232_s27  ;;  %p2362_p13 = scmp.lt.s32.totalorder %s2604_s20, 4 }
  0x2b   : > { %s558_s21 = sand.u32 1, %s2584_s29   ;;  %s2133_s17 = sshll.u32 %s2600_s1, 7 }
  0x2c   : > { %s2787_s22 = scalar_select %p51_p12, %s2584_s29, %s53_s24  }
  0x2d   : > { %s2132_s18 = sshll.u32 %s558_s21, 3  ;;  %s3235_s14 = sld [smem:[#allocation25_spill]] }
  0x2e   : > { %3234 = sst [smem:[#allocation20_spill]] %s2787_s22  ;;  %s562_s23 = scalar_lea.vmem [#allocation3], %s2132_s18 }
  0x2f   : > { %s569_s2 = sshll.u32 %s562_s23, 4  ;;  %p2799_p0 = pnand %p2362_p13, %p2762_p3  ;;  %s2795_s2 = int_to_ptr.vmem [resolvable:$true] %s569_s2 }
  0x30   : > { %s559_s15 = scalar_lea.sflag [#allocation4], %s558_s21 }
  0x31   : > { %p2478_p5 = pneg %p2799_p0 }
  0x33   : > { %s2793_s13 = scalar_lea.hbm %s3235_s14, %s2133_s17  ;;  %s2481_s23 = scalar_lea.hbm %s3235_s14, 256 }
  0x34   : > { %s2476_s16 = scalar_lea.hbm %s2793_s13, 128  ;;  %p2482_p3 = scmp.lt.u32.totalorder %s2793_s13, %s3235_s14 }
  0x35   : > { %p2477_p4 = scmp.ne.s32.totalorder %s2793_s13, %s2476_s16  ;;  %p2483_p8 = scmp.lt.u32.totalorder %s2481_s23, %s2476_s16 }
  0x36   : > { %p2485_p13 = scmp.lt.u32.totalorder %s2476_s16, %s2793_s13 }
  0x37   : > { %p2479_p6 = pnand %p2478_p5, %p2477_p4  ;;  %p2484_p12 = por %p2483_p8, %p2482_p3 }
  0x39   : > { %p2480_p7 = pneg %p2479_p6  ;;  %p2486_p1 = por %p2485_p13, %p2484_p12 }
  0x3b   : > { %p2487_p2 = pnand %p2486_p1, %p2480_p7 }
  0x3d   : > { %2490 = shalt.err (!%p2487_p2)
}
  0x3e   : > { %s2491_s21 = scalar_lea.vmem %s2795_s2, 128  ;;  %s2606_s17 = smov [#allocation3]  }
  0x3f   : > { %p2492_p4 = scmp.ne.s32.totalorder %s2795_s2, %s2491_s21  ;;  %s2496_s18 = sshll.u32 %s2606_s17, 4  ;;  %s2497_s18 = int_to_ptr.vmem [resolvable:$false] %s2496_s18 }
  0x40   : > { %s2498_s24 = scalar_lea.vmem %s2497_s18, 256  ;;  %p2499_p10 = scmp.lt.s32.totalorder %s2795_s2, %s2497_s18 }
  0x41   : > { %p2494_p6 = pnand %p2492_p4, %p2478_p5  ;;  %p2500_p3 = scmp.lt.s32.totalorder %s2498_s24, %s2491_s21 }
  0x43   : > { %p2495_p11 = pneg %p2494_p6  ;;  %p2501_p8 = por %p2500_p3, %p2499_p10 }
  0x45   : > { %p2502_p12 = pnand %p2501_p8, %p2495_p11 }
  0x47   : > { %2505 = shalt.err (!%p2502_p12)
}
  0x48   : > { %2357 = dma.hbm_to_vmem [thread:$0]  (!%p2799_p0), %s2793_s13, 128, %s2795_s2, %s559_s15  }
  0x49   : > { %p3237_p1 = scmp.lt.s32.totalorder %s2604_s20, 5  ;;  %p3238_p2 = scmp.ge.s32.totalorder %s2604_s20, 1 }
  0x4b   : > { %p689_p5 = pnand %p3238_p2, %p3237_p1 }
  0x4d   : > { %692 = sbr.rel (%p689_p5) target bundleno = 2658 (0xa62), region = 92 }
  0x54   : > { %s2835_s16 = sand.u32 1, %s2580_s28  }
  0x55   : > { %3239 = sst [smem:[#allocation21_spill]] %s2835_s16  ;;  %s2135_s23 = sshll.u32 %s2835_s16, 3 }
  0x56   : > { %s695_s25 = scalar_lea.sflag [#allocation4], %s2835_s16  ;;  %s698_s21 = scalar_lea.vmem [#allocation3], %s2135_s23 }
  0x57   : > { %2567 = dma.done.wait (%p2770_p9), %s695_s25, 128  }
  0x58   : > { %2569 = vsyncadd (%p2770_p9), %s695_s25, 4294967168  ;;  %p814_p10 = scmp.lt.s32.totalorder %s2592_s0, 1  ;;  %p817_p11 = scmp.lt.s32.totalorder %s2588_s30, 1 }
  0x59   : > { %s3242_s19 = sld [smem:[#allocation27_spill]]  ;;  %s3243_s4 = sld [smem:[#allocation28_spill]] }
  0x5a   : > { %s2846_s13 = scalar_select %p814_p10, %s2592_s0, 1 }
  0x5b   : > { %s2849_s2 = scalar_select %p817_p11, %s2588_s30, 1 }
  0x5c   : > { %3240 = sst [smem:[#allocation22_spill]] %s2846_s13  ;;  %s3244_s6 = sld [smem:[#allocation29_spill]] }
  0x5d   : > { %s2196_s18 = sshll.u32 %s2849_s2, 4  ;;  %s3246_s8 = sld [smem:[#allocation30_spill]] }
  0x5e   : > { %s3251_s12 = sld [smem:[#allocation34_spill]]  ;;  %s3252_s1 = sld [smem:[#allocation35_spill]] }
  0x5f   : > { %s821_s15 = scalar_lea.vmem %s3242_s19, %s2196_s18  ;;  %s2866_s27 = scalar_lea.vmem %s3243_s4, %s2196_s18 }
  0x60   : > { %s3253_s4 = sld [smem:[#allocation36_spill]]  ;;  %s3254_s17 = sld [smem:[#allocation37_spill]] }
  0x61   : > { %s3255_s11 = sld [smem:[#allocation38_spill]]  ;;  %s2925_s22 = scalar_lea.vmem [#allocation6], %s2135_s23 }
  0x62   : > { %s2875_s24 = scalar_lea.vmem %s3244_s6, %s2196_s18  ;;  %p2149_p9 = scmp.ne.s32.totalorder %s2588_s30, 0 }
  0x63   : > { %3245 = sst [smem:[#allocation23_spill]] %s2875_s24  ;;  %s2884_s13 = scalar_lea.vmem %s3246_s8, %s2196_s18  ;;  %v882_v0 = vld [vmem:[%s698_s21] sm:$0xff] (!%p2149_p9)  ;;  %vm883_vm0 = vcmask (!%p2149_p9), 261120  }
  0x64   : > { %3247 = sst [smem:[#allocation24_spill]] %s2884_s13  ;;  %s2901_s25 = scalar_lea.vmem %s3251_s12, %s2196_s18  ;;  %884 = vst.msk [vmem:[%s2925_s22] sm:$0xff] (!%p2149_p9), %vm883_vm0, %v882_v0 }
  0x65   : > { %s862_s8 = scalar_lea.vmem %s3252_s1, %s2849_s2  ;;  %s2201_s13 = sshll.u32 %s2849_s2, 6 }
  0x66   : > { %s2911_s9 = scalar_lea.vmem %s3253_s4, %s2201_s13  ;;  %s870_s0 = scalar_lea.vmem %s3254_s17, %s2849_s2 }
  0x67   : > { %s873_s24 = scalar_lea.vmem %s3255_s11, %s2849_s2  ;;  %s3256_s12 = sld [smem:[#allocation39_spill]] }
  0x68   : > { %881 = sbr.rel (%p2149_p9) target bundleno = 111 (0x6f), region = 100 }
  0x6d   : > { %s876_s10 = scalar_lea.vmem %s3256_s12, %s2849_s2 }
  0x6f PF: > { %v2436_v1 = vld [vmem:[%s821_s15] sm:$0xff]   ;;  %v2607_v2 = vmov 0.0   ;;  %v2437_v3 = vld [vmem:[%s821_s15 + $0x8] sm:$0xff]   ;;  %vm2608_vm1 = vmmov 0   ;;  %vm910_vm2 = vcmask 261120   ;;  %s3257_s11 = scalar_lea.vmem %s3169_s5, %s2849_s2  ;;  %s3258_s30 = scalar_lea.vmem %s3167_s3, %s2849_s2  ;;  %vm1090_vm3 = vcmask 64512  }
  0x70   : > { %2242 = vmatprep.subr.bf16.mxu0 %v2607_v2  ;;  %2266 = vmatprep.subr.bf16.mxu1 %v2607_v2  ;;  %v2934_v4 = vld [vmem:[%s2925_s22] sm:$0xff]  ;;  %v2439_v7 = vld [vmem:[%s2866_s27 + $0x8] sm:$0xff]   ;;  %s3259_s23 = sld [smem:[#allocation23_spill]]  ;;  %s2609_s21 = smov 112   ;;  %vm1152_vm4 = vcmask 1043456   ;;  %vm1314_vm5 = vcmask 130112  }
  0x71   : > { %2243 = vmatpush3.bf16.msra.mxu0 %v2436_v1  ;;  %2246 = vmatprep.mubr.msk.bf16.mxu0 %vm2608_vm1, %v2607_v2  ;;  %v2438_v5 = vld [vmem:[%s2866_s27] sm:$0xff]   ;;  %v886_v6 = vpack.c.bf16 %v2934_v4, %v2934_v4  ;;  %s2610_s13 = smov 120   ;;  %s2611_s15 = smov 104   ;;  %vm1430_vm6 = vcmask 195712   ;;  %vm1546_vm7 = vcmask 261312  }
  0x72   : > { %2244 = vmatprep.subr.bf16.mxu0 %v2607_v2  ;;  %2268 = vmatprep.mubr.msk.bf16.mxu1 %vm2608_vm1, %v2607_v2  ;;  %v2154_v12 = vld [vmem:[%s3257_s11] ss:$0 sm:$0xff]  ;;  %s3260_s17 = sld [smem:[#allocation22_spill]]  ;;  %s3261_s28 = sld [smem:[#allocation26_spill]] }
  0x73   : > { %v2150_v13 = vld [vmem:[%s3258_s30] ss:$0 sm:$0xff]  ;;  %s3263_s26 = scalar_lea.vmem %s3171_s7, %s2849_s2  ;;  %s3264_s18 = sld [smem:[#allocation24_spill]] }
  0x74   : > { %v2158_v41 = vld [vmem:[%s3263_s26] ss:$0 sm:$0xff]  ;;  %s2612_s14 = smov 8   ;;  %s2613_s4 = smov 16  }
  0x75   : > { %2245 = vmatpush3.bf16.msra.mxu0 %v2437_v3  ;;  %s2614_s6 = smov 24   ;;  %s3265_s27 = sld [smem:[#allocation31_spill]] }
  0x76   : > { %2250 = vmatprep.subr.bf16.mxu0 %v2607_v2  ;;  %v2440_v23 = vld [vmem:[%s3259_s23] sm:$0xff]   ;;  %v2441_v24 = vld [vmem:[%s3259_s23 + $0x8] sm:$0xff]   ;;  %s3269_s1 = sld [smem:[#allocation33_spill]] }
  0x78   : > { %2247 = vmatmul.mubr.msk.bf16.vlgmr.msra.gmra.mrb[0].mxu0 %vm910_vm2, %v886_v6  ;;  %s3262_s29 = scalar_lea.vmem %s3261_s28, %s3260_s17 }
  0x79   : > { %2251 = vmatpush3.bf16.msra.mxu0 %v2438_v5  ;;  %2254 = vmatprep.mubr.msk.bf16.mxu0 %vm2608_vm1, %v2607_v2  ;;  %v2162_v34 = vld [vmem:[%s3262_s29] ss:$0 sm:$0xff] }
  0x7a   : > { %2252 = vmatprep.subr.bf16.mxu0 %v2607_v2 }
  0x7b   : > { %s3266_s30 = scalar_lea.vmem %s3265_s27, %s2849_s2 }
  0x7c   : > { %s3270_s19 = scalar_lea.vmem %s3269_s1, %s2849_s2 }
  0x7d   : > { %2253 = vmatpush3.bf16.msra.mxu0 %v2439_v7 }
  0x7e   : > { %2258 = vmatprep.subr.bf16.mxu0 %v2607_v2 }
  0x80   : > { %2255 = vmatmul.mubr.msk.bf16.vlgmr.msra.gmra.mrb[4].mxu0 %vm910_vm2, %v886_v6 }
  0x81   : > { %2262 = vmatprep.mubr.msk.bf16.mxu0 %vm2608_vm1, %v2607_v2  ;;  %2259 = vmatpush3.bf16.msra.mxu0 %v2440_v23 }
  0x82   : > { %2260 = vmatprep.subr.bf16.mxu0 %v2607_v2 }
  0x85   : > { %2261 = vmatpush3.bf16.msra.mxu0 %v2441_v24 }
  0x86   : > { %2272 = vmatprep.subr.bf16.mxu0 %v2607_v2 }
  0x88   : > { %2263 = vmatmul.mubr.msk.bf16.vlgmr.msra.gmra.mrb[8].mxu0 %vm910_vm2, %v886_v6 }
  0x89   : > { %2274 = vmatprep.mubr.msk.bf16.mxu0 %vm2608_vm1, %v2607_v2 }
 0x14b   : > { %v948_v8 = vpop.f32.mrb[0].mxu0 }
 0x14c   : > { %v2248_v9 = vpop.f32.mrb[1].mxu0  ;;  %v949_v18 = vadd.f32 %v2150_v13, %v948_v8 }
 0x14d   : > { %v951_v10 = vpop.f32.mrb[2].mxu0 }
 0x14e   : > { %v2249_v11 = vpop.f32.mrb[3].mxu0  ;;  %v1080_v22 = vpack.c.bf16 %v949_v18, %v949_v18 }
 0x153   : > { %v1011_v14 = vpop.f32.mrb[4].mxu0 }
 0x154   : > { %v1012_v15 = vadd.f32 %v2154_v12, %v1011_v14  ;;  %v2256_v16 = vpop.f32.mrb[5].mxu0 }
 0x155   : > { %v1014_v17 = vpop.f32.mrb[6].mxu0 }
 0x156   : > { %v1081_v19 = vpack.c.bf16 %v1012_v15, %v1012_v15  ;;  %v2257_v20 = vpop.f32.mrb[7].mxu0 }
 0x158   : > { %1318 = vrot.lane.b32.xlu1 %v1081_v19, %s2609_s21  ;;  %1201 = vrot.lane.b32.xlu0 %v1081_v19, %s2610_s13  ;;  %v1095_v21 = vsel %vm1090_vm3, %v1081_v19, 0 }
 0x159   : > { %2267 = vmatpush3.bf16.xpose.msra.mxu1 %v1095_v21 }
 0x15a   : > { %2278 = vmatprep.subr.bf16.mxu1 %v2607_v2 }
 0x15b   : > { %v1074_v42 = vpop.f32.mrb[8].mxu0 }
 0x15c   : > { %1316 = vrot.lane.b32.xlu1 %v1080_v22, %s2609_s21  ;;  %1198 = vrot.lane.b32.xlu0 %v1080_v22, %s2610_s13  ;;  %v1075_v43 = vadd.f32 %v2158_v41, %v1074_v42  ;;  %v2264_v44 = vpop.f32.mrb[9].mxu0 }
 0x15d   : > { %v1077_v45 = vpop.f32.mrb[10].mxu0 }
 0x15e   : > { %v1082_v46 = vpack.c.bf16 %v1075_v43, %v1075_v43  ;;  %v2265_v47 = vpop.f32.mrb[11].mxu0 }
 0x160   : > { %1432 = vrot.lane.b32.xlu1 %v1080_v22, %s2611_s15  ;;  %1434 = vrot.lane.b32.xlu0 %v1081_v19, %s2611_s15  ;;  %v1154_v48 = vsel %vm1152_vm4, %v1082_v46, 0 }
 0x161   : > { %2269 = vmatmul.mubr.msk.bf16.vlgmr.msra.gmra.mrb[0].mxu1 %vm1090_vm3, %v1080_v22  ;;  %2273 = vmatpush3.bf16.msra.mxu0 %v1154_v48 }
 0x162   : > { %2280 = vmatprep.mubr.msk.bf16.mxu1 %vm2608_vm1, %v2607_v2  ;;  %2284 = vmatprep.subr.bf16.mxu0 %v2607_v2 }
 0x1ca   : > { %v1202_v25 = vpop.permute.xlu0 %1201  ;;  %v1319_v27 = vpop.permute.xlu1 %1318 }
 0x1cb   : > { %v1207_v26 = vsel %vm1090_vm3, %v1202_v25, 0  ;;  %v1324_v29 = vsel %vm1090_vm3, %v1319_v27, 0 }
 0x1cc   : > { %2279 = vmatpush3.bf16.xpose.msra.mxu1 %v1207_v26 }
 0x1cd   : > { %2290 = vmatprep.subr.bf16.mxu1 %v2607_v2 }
 0x1ce   : > { %v1199_v28 = vpop.permute.xlu0 %1198  ;;  %v1317_v31 = vpop.permute.xlu1 %1316 }
 0x1d2   : > { %v1435_v30 = vpop.permute.xlu0 %1434  ;;  %v1433_v33 = vpop.permute.xlu1 %1432 }
 0x1d3   : > { %2281 = vmatmul.mubr.msk.bf16.vlgmr.msra.gmra.mrb[4].mxu1 %vm1090_vm3, %v1199_v28  ;;  %v1440_v32 = vsel %vm1090_vm3, %v1435_v30, 0 }
 0x1d4   : > { %2291 = vmatpush3.bf16.xpose.msra.mxu1 %v1324_v29  ;;  %2292 = vmatprep.mubr.msk.bf16.mxu1 %vm2608_vm1, %v2607_v2 }
 0x1d5   : > { %2302 = vmatprep.subr.bf16.mxu1 %v2607_v2 }
 0x1db   : > { %2293 = vmatmul.mubr.msk.bf16.vlgmr.msra.gmra.mrb[8].mxu1 %vm1090_vm3, %v1317_v31 }
 0x1dc   : > { %2303 = vmatpush3.bf16.xpose.msra.mxu1 %v1440_v32  ;;  %2304 = vmatprep.mubr.msk.bf16.mxu1 %vm2608_vm1, %v2607_v2 }
 0x1dd   : > { %2314 = vmatprep.subr.bf16.mxu1 %v2607_v2 }
 0x1e3   : > { %2305 = vmatmul.mubr.msk.bf16.vlgmr.msra.gmra.mrb[12].mxu1 %vm1090_vm3, %v1433_v33 }
 0x1e4   : > { %2318 = vmatprep.mubr.msk.bf16.mxu1 %vm2608_vm1, %v2607_v2 }
 0x234   : > { %v1131_v35 = vpop.f32.mrb[0].mxu1 }
 0x235   : > { %v1132_v36 = vadd.f32 %v2162_v34, %v1131_v35  ;;  %v2270_v37 = vpop.f32.mrb[1].mxu1 }
 0x236   : > { %v1134_v38 = vpop.f32.mrb[2].mxu1 }
 0x237   : > { %v2271_v39 = vpop.f32.mrb[3].mxu1  ;;  %v1137_v40 = vsel %vm1090_vm3, %v1132_v36, -inf }
 0x238   : > { %1138 = vmax.xlane.f32.xlu0 %v1137_v40 }
 0x2a6   : > { %v1243_v49 = vpop.f32.mrb[4].mxu1 }
 0x2a7   : > { %v1244_v50 = vadd.f32 %v2162_v34, %v1243_v49  ;;  %v2282_v51 = vpop.f32.mrb[5].mxu1 }
 0x2a8   : > { %v1246_v52 = vpop.f32.mrb[6].mxu1 }
 0x2a9   : > { %v2283_v53 = vpop.f32.mrb[7].mxu1  ;;  %v1249_v54 = vsel %vm1090_vm3, %v1244_v50, -inf }
 0x2aa   : > { %1250 = vmax.xlane.f32.xlu1 %v1249_v54 }
 0x2ae   : > { %v1360_v55 = vpop.f32.mrb[8].mxu1 }
 0x2af   : > { %v1361_v56 = vadd.f32 %v2162_v34, %v1360_v55  ;;  %v2294_v57 = vpop.f32.mrb[9].mxu1  ;;  %v2442_v55 = vld [vmem:[%s3264_s18] sm:$0xff]  }
 0x2b0   : > { %v1363_v58 = vpop.f32.mrb[10].mxu1  ;;  %2315 = vmatpush3.bf16.msra.mxu1 %v2442_v55 }
 0x2b1   : > { %v2295_v59 = vpop.f32.mrb[11].mxu1  ;;  %v1366_v60 = vsel %vm1090_vm3, %v1361_v56, -inf  ;;  %2316 = vmatprep.subr.bf16.mxu1 %v2607_v2 }
 0x2b2   : > { %1367 = vmax.xlane.f32.xlu0 %v1366_v60 }
 0x2b6   : > { %v1476_v61 = vpop.f32.mrb[12].mxu1 }
 0x2b7   : > { %v1477_v62 = vadd.f32 %v2162_v34, %v1476_v61  ;;  %v2306_v63 = vpop.f32.mrb[13].mxu1 }
 0x2b8   : > { %v1479_v0 = vpop.f32.mrb[14].mxu1 }
 0x2b9   : > { %v2307_v1 = vpop.f32.mrb[15].mxu1  ;;  %v1482_v3 = vsel %vm1090_vm3, %v1477_v62, -inf }
 0x2ba   : > { %1483 = vmax.xlane.f32.xlu0 %v1482_v3 }
 0x2c5   : > { %v1139_v5 = vpop.xlane.xlu0 %1138 }
 0x2c6   : > { %v1140_v6 = vsub.f32 %v1132_v36, %v1139_v5 }
 0x2c8   : > { %v1141_v7 = vmul.f32 1.442695, %v1140_v6 }
 0x2ca   : > { %2454 = vpow2.f32 %v1141_v7 }
 0x2d4   : > { %v2455_v8 = vpop.eup %2454 }
 0x2d5   : > { %v1143_v9 = vsel %vm1090_vm3, %v2455_v8, 0.0 }
 0x2d6   : > { %1144 = vadd.xlane.f32.xlu1 %v1143_v9 }
 0x2e7   : > { %1262 = vrot.lane.b32.xlu1 %v1082_v46, %s2610_s13 }
 0x337   : > { %v1251_v10 = vpop.xlane.xlu1 %1250 }
 0x338   : > { %v1252_v11 = vsub.f32 %v1244_v50, %v1251_v10 }
 0x33a   : > { %v1253_v12 = vmul.f32 1.442695, %v1252_v11 }
 0x33c   : > { %2456 = vpow2.f32 %v1253_v12 }
 0x33f   : > { %v1368_v13 = vpop.xlane.xlu0 %1367 }
 0x340   : > { %v1369_v14 = vsub.f32 %v1361_v56, %v1368_v13  ;;  %v2443_v56 = vld [vmem:[%s3264_s18 + $0x8] sm:$0xff]   ;;  %s3275_s18 = sld [smem:[#allocation18_spill]] }
 0x341   : > { %2317 = vmatpush3.bf16.msra.mxu1 %v2443_v56 }
 0x342   : > { %v1370_v15 = vmul.f32 1.442695, %v1369_v14  ;;  %2330 = vmatprep.subr.bf16.mxu1 %v2607_v2 }
 0x344   : > { %2458 = vpow2.f32 %v1370_v15 }
 0x346   : > { %v2457_v16 = vpop.eup %2456  ;;  %p3279_p7 = scmp.ne.s32.totalorder %s3275_s18, 0 }
 0x347   : > { %v1484_v17 = vpop.xlane.xlu0 %1483  ;;  %v1255_v18 = vsel %vm1090_vm3, %v2457_v16, 0.0 }
 0x348   : > { %v1485_v19 = vsub.f32 %v1477_v62, %v1484_v17  ;;  %1256 = vadd.xlane.f32.xlu0 %v1255_v18 }
 0x34a   : > { %v1486_v20 = vmul.f32 1.442695, %v1485_v19 }
 0x34c   : > { %2460 = vpow2.f32 %v1486_v20 }
 0x34e   : > { %v2459_v21 = vpop.eup %2458 }
 0x34f   : > { %v1372_v22 = vsel %vm1090_vm3, %v2459_v21, 0.0 }
 0x350   : > { %1373 = vadd.xlane.f32.xlu1 %v1372_v22  ;;  %v2445_v22 = vld [vmem:[%s2901_s25 + $0x8] sm:$0xff]  }
 0x356   : > { %v2461_v23 = vpop.eup %2460 }
 0x357   : > { %v1488_v24 = vsel %vm1090_vm3, %v2461_v23, 0.0 }
 0x358   : > { %1489 = vadd.xlane.f32.xlu0 %v1488_v24  ;;  %v2448_v24 = vld [vmem:[%s2911_s9 + $0x10] sm:$0xff]  }
 0x361   : > { %1494 = vrot.lane.b32.xlu1 %v1082_v46, %s2611_s15 }
 0x363   : > { %v1145_v25 = vpop.xlane.xlu1 %1144 }
 0x364   : > { %2462 = vrcp.f32 %v1145_v25 }
 0x367   : > { %v1263_v27 = vpop.permute.xlu1 %1262 }
 0x368   : > { %v1268_v30 = vsel %vm1152_vm4, %v1263_v27, 0 }
 0x36e   : > { %v2463_v26 = vpop.eup %2462  ;;  %1378 = vrot.lane.b32.xlu0 %v1082_v46, %s2609_s21  ;;  %s3267_s21 = sld [smem:[#allocation32_spill]] }
 0x36f   : > { %v1147_v28 = vmul.f32 %v2463_v26, %v2455_v8  ;;  %v2171_v8 = vld [vmem:[%s3266_s30] ss:$0 sm:$0xff] }
 0x371   : > { %v1148_v29 = vpack.c.bf16 %v1147_v28, %v1147_v28 }
 0x373   : > { %2275 = vmatmul.mubr.msk.bf16.vlgmr.msra.gmra.mrb[12].mxu0 %vm1090_vm3, %v1148_v29 }
 0x374   : > { %2285 = vmatpush3.bf16.msra.mxu0 %v1268_v30  ;;  %2286 = vmatprep.mubr.msk.bf16.mxu0 %vm2608_vm1, %v2607_v2  ;;  %s3268_s13 = scalar_lea.vmem %s3267_s21, %s2849_s2 }
 0x375   : > { %2296 = vmatprep.subr.bf16.mxu0 %v2607_v2  ;;  %v2175_v29 = vld [vmem:[%s3268_s13] ss:$0 sm:$0xff]  ;;  %s3278_s13 = sld [smem:[#allocation40_spill]] }
 0x3d5   : > { %v1257_v31 = vpop.xlane.xlu0 %1256 }
 0x3d6   : > { %2464 = vrcp.f32 %v1257_v31  ;;  %v2176_v31 = vld [vmem:[%s3270_s19] ss:$0 sm:$0xff] }
 0x3dd   : > { %v1374_v32 = vpop.xlane.xlu1 %1373 }
 0x3de   : > { %2466 = vrcp.f32 %v1374_v32 }
 0x3e0   : > { %v2465_v33 = vpop.eup %2464 }
 0x3e1   : > { %v1259_v34 = vmul.f32 %v2465_v33, %v2457_v16  ;;  %v1495_v41 = vpop.permute.xlu1 %1494 }
 0x3e2   : > { %v1500_v43 = vsel %vm1152_vm4, %v1495_v41, 0 }
 0x3e3   : > { %v1260_v35 = vpack.c.bf16 %v1259_v34, %v1259_v34 }
 0x3e5   : > { %v1490_v36 = vpop.xlane.xlu0 %1489  ;;  %2287 = vmatmul.mubr.msk.bf16.vlgmr.msra.gmra.mrb[16].mxu0 %vm1090_vm3, %v1260_v35  ;;  %v2449_v35 = vld [vmem:[%s2911_s9 + $0x18] sm:$0xff]  }
 0x3e6   : > { %2468 = vrcp.f32 %v1490_v36  ;;  %2298 = vmatprep.mubr.msk.bf16.mxu0 %vm2608_vm1, %v2607_v2  ;;  %v2450_v36 = vld [vmem:[%s2911_s9 + $0x20] sm:$0xff]  }
 0x3e8   : > { %v2467_v37 = vpop.eup %2466 }
 0x3e9   : > { %v1376_v38 = vmul.f32 %v2467_v37, %v2459_v21  ;;  %v1379_v39 = vpop.permute.xlu0 %1378  ;;  %v2444_v21 = vld [vmem:[%s2901_s25] sm:$0xff]   ;;  %v2451_v37 = vld [vmem:[%s2911_s9 + $0x28] sm:$0xff]   ;;  %s1876_s25 = sshll.u32 %s2925_s22, 4  ;;  %s3110_s25 = int_to_ptr.vmem [resolvable:$true] %s1876_s25 }
 0x3ea   : > { %v1384_v40 = vsel %vm1152_vm4, %v1379_v39, 0  ;;  %v2453_v39 = vld [vmem:[%s2911_s9 + $0x38] sm:$0xff]   ;;  %s2506_s17 = scalar_lea.vmem %s3110_s25, 128 }
 0x3eb   : > { %2297 = vmatpush3.bf16.msra.mxu0 %v1384_v40  ;;  %v1377_v42 = vpack.c.bf16 %v1376_v38, %v1376_v38  ;;  %v2452_v38 = vld [vmem:[%s2911_s9 + $0x30] sm:$0xff]   ;;  %v2177_v40 = vld [vmem:[%s862_s8] ss:$0 sm:$0xff]  ;;  %s3273_s8 = sld [smem:[#allocation12_spill]]  ;;  %p2507_p0 = scmp.ne.s32.totalorder %s3110_s25, %s2506_s17 }
 0x3ec   : > { %2308 = vmatprep.subr.bf16.mxu0 %v2607_v2 }
 0x3ed   : > { %p2508_p13 = pnand %p2507_p0, %p3279_p7 }
 0x3ee   : > { %2299 = vmatmul.mubr.msk.bf16.vlgmr.msra.gmra.mrb[20].mxu0 %vm1090_vm3, %v1377_v42 }
 0x3ef   : > { %2309 = vmatpush3.bf16.msra.mxu0 %v1500_v43  ;;  %2310 = vmatprep.mubr.msk.bf16.mxu0 %vm2608_vm1, %v2607_v2  ;;  %p2509_p4 = pneg %p2508_p13 }
 0x3f0   : > { %v2469_v44 = vpop.eup %2468  ;;  %2322 = vmatprep.subr.bf16.mxu0 %v2607_v2 }
 0x3f1   : > { %v1492_v45 = vmul.f32 %v2469_v44, %v2461_v23  ;;  %v2447_v23 = vld [vmem:[%s2911_s9 + $0x8] sm:$0xff]   ;;  %s2193_s30 = sshll.u32 %s3273_s8, 7 }
 0x3f2   : > { %s3108_s15 = scalar_lea.hbm %s3278_s13, %s2193_s30 }
 0x3f3   : > { %v1493_v46 = vpack.c.bf16 %v1492_v45, %v1492_v45 }
 0x3f6   : > { %2311 = vmatmul.mubr.msk.bf16.vlgmr.msra.gmra.mrb[24].mxu0 %vm1090_vm3, %v1493_v46 }
 0x3f7   : > { %2326 = vmatprep.mubr.msk.bf16.mxu0 %vm2608_vm1, %v2607_v2  ;;  %2323 = vmatpush3.bf16.msra.mxu0 %v2444_v21 }
 0x3f8   : > { %2324 = vmatprep.subr.bf16.mxu0 %v2607_v2 }
 0x3fb   : > { %2325 = vmatpush3.bf16.msra.mxu0 %v2445_v22 }
 0x446   : > { %v1190_v47 = vpop.f32.mrb[12].mxu0 }
 0x447   : > { %1196 = vst.msk [vmem:[#allocation2] sm:$0xff] %vm1090_vm3, %v1190_v47  ;;  %v2276_v48 = vpop.f32.mrb[13].mxu0 }
 0x448   : > { %v1193_v49 = vpop.f32.mrb[14].mxu0 }
 0x449   : > { %v2277_v50 = vpop.f32.mrb[15].mxu0 }
 0x4b8   : > { %v1304_v51 = vpop.f32.mrb[16].mxu0 }
 0x4b9   : > { %1311 = vrot.lane.b32.xlu1 %v1304_v51, %s2612_s14  ;;  %v2288_v52 = vpop.f32.mrb[17].mxu0  ;;  %v2181_v51 = vld [vmem:[%s870_s0] ss:$0 sm:$0xff]  ;;  %s3274_s0 = sld [smem:[#allocation21_spill]] }
 0x4ba   : > { %v1307_v53 = vpop.f32.mrb[18].mxu0 }
 0x4bb   : > { %v2289_v54 = vpop.f32.mrb[19].mxu0 }
 0x4c1   : > { %v1420_v57 = vpop.f32.mrb[20].mxu0 }
 0x4c2   : > { %1427 = vrot.lane.b32.xlu0 %v1420_v57, %s2613_s4  ;;  %v2300_v58 = vpop.f32.mrb[21].mxu0 }
 0x4c3   : > { %v1423_v59 = vpop.f32.mrb[22].mxu0 }
 0x4c4   : > { %v2301_v60 = vpop.f32.mrb[23].mxu0 }
 0x4c9   : > { %v1536_v61 = vpop.f32.mrb[24].mxu0 }
 0x4ca   : > { %1543 = vrot.lane.b32.xlu1 %v1536_v61, %s2614_s6  ;;  %v2312_v62 = vpop.f32.mrb[25].mxu0 }
 0x4cb   : > { %v1539_v63 = vpop.f32.mrb[26].mxu0 }
 0x4cc   : > { %v2313_v0 = vpop.f32.mrb[27].mxu0 }
 0x52b   : > { %v1312_v1 = vpop.permute.xlu1 %1311 }
 0x52c   : > { %1315 = vst.msk [vmem:[#allocation2] sm:$0xff] %vm1314_vm5, %v1312_v1 }
 0x534   : > { %v1428_v3 = vpop.permute.xlu0 %1427 }
 0x535   : > { %1431 = vst.msk [vmem:[#allocation2] sm:$0xff] %vm1430_vm6, %v1428_v3 }
 0x53c   : > { %v1544_v5 = vpop.permute.xlu1 %1543 }
 0x53d   : > { %1547 = vst.msk [vmem:[#allocation2] sm:$0xff] %vm1546_vm7, %v1544_v5 }
 0x544   : > { %v1548_v6 = vld [vmem:[#allocation2] sm:$0xff] }
 0x545   : > { %v1549_v7 = vpack.c.bf16 %v1548_v6, %v1548_v6  ;;  %v2190_v6 = vld [vmem:[%s873_s24] ss:$0 sm:$0xff]  ;;  %s1863_s24 = scalar_lea.sflag [#allocation5], %s3274_s0 }
 0x547   : > { %2319 = vmatmul.mubr.msk.bf16.vlgmr.msra.gmra.mrb[16].mxu1 %vm910_vm2, %v1549_v7 }
 0x548   : > { %2346 = vmatprep.mubr.msk.bf16.mxu1 %vm2608_vm1, %v2607_v2 }
 0x61a   : > { %v1610_v9 = vpop.f32.mrb[16].mxu1 }
 0x61b   : > { %v1611_v10 = vadd.f32 %v2171_v8, %v1610_v9  ;;  %v2320_v11 = vpop.f32.mrb[17].mxu1  ;;  %v2191_v8 = vld [vmem:[%s876_s10] ss:$0 sm:$0xff]  ;;  %s2615_s10 = smov [#allocation6]  }
 0x61c   : > { %v1613_v12 = vpop.f32.mrb[18].mxu1  ;;  %s2510_s2 = sshll.u32 %s2615_s10, 4  ;;  %s2511_s2 = int_to_ptr.vmem [resolvable:$false] %s2510_s2 }
 0x61d   : > { %v2321_v13 = vpop.f32.mrb[19].mxu1  ;;  %v1616_v14 = vadd.f32 %v1611_v10, %v2934_v4  ;;  %v2446_v4 = vld [vmem:[%s2911_s9] sm:$0xff]   ;;  %s2512_s1 = scalar_lea.vmem %s2511_s2, 256  ;;  %p2513_p6 = scmp.lt.s32.totalorder %s3110_s25, %s2511_s2 }
 0x61e   : > { %2331 = vmatpush3.bf16.msra.mxu1 %v2446_v4  ;;  %p2514_p3 = scmp.lt.s32.totalorder %s2512_s1, %s2506_s17 }
 0x61f   : > { %v1619_v15 = vsel %vm910_vm2, %v1616_v14, 0.0  ;;  %2332 = vmatprep.subr.bf16.mxu1 %v2607_v2 }
 0x620   : > { %1620 = vadd.xlane.f32.xlu0 %v1619_v15  ;;  %p2515_p8 = por %p2514_p3, %p2513_p6 }
 0x622   : > { %2333 = vmatpush3.bf16.msra.mxu1 %v2447_v23  ;;  %p2516_p12 = pnand %p2515_p8, %p2509_p4 }
 0x623   : > { %2334 = vmatprep.subr.bf16.mxu1 %v2607_v2 }
 0x626   : > { %2335 = vmatpush3.bf16.msra.mxu1 %v2448_v24 }
 0x627   : > { %2336 = vmatprep.subr.bf16.mxu1 %v2607_v2 }
 0x62a   : > { %2337 = vmatpush3.bf16.msra.mxu1 %v2449_v35 }
 0x62b   : > { %2338 = vmatprep.subr.bf16.mxu1 %v2607_v2 }
 0x62e   : > { %2339 = vmatpush3.bf16.msra.mxu1 %v2450_v36 }
 0x62f   : > { %2340 = vmatprep.subr.bf16.mxu1 %v2607_v2 }
 0x632   : > { %2341 = vmatpush3.bf16.msra.mxu1 %v2451_v37 }
 0x633   : > { %2342 = vmatprep.subr.bf16.mxu1 %v2607_v2 }
 0x636   : > { %2343 = vmatpush3.bf16.msra.mxu1 %v2452_v38 }
 0x637   : > { %2344 = vmatprep.subr.bf16.mxu1 %v2607_v2 }
 0x63a   : > { %2345 = vmatpush3.bf16.msra.mxu1 %v2453_v39 }
 0x6ad   : > { %v1621_v16 = vpop.xlane.xlu0 %1620 }
 0x6ae   : > { %v1623_v17 = vmul.f32 0.03125, %v1621_v16 }
 0x6b0   : > { %v1624_v18 = vsub.f32 %v1616_v14, %v1623_v17 }
 0x6b2   : > { %v1625_v19 = vmul.f32 %v1624_v18, %v1624_v18 }
 0x6b4   : > { %v1626_v20 = vsel %vm910_vm2, %v1625_v19, 0.0 }
 0x6b5   : > { %1627 = vadd.xlane.f32.xlu1 %v1626_v20 }
 0x742   : > { %v1628_v25 = vpop.xlane.xlu1 %1627 }
 0x743   : > { %v1629_v26 = vmul.f32 0.03125, %v1628_v25 }
 0x745   : > { %v1630_v27 = vadd.f32 1e-12, %v1629_v26 }
 0x747   : > { %2470 = vrsqrt.f32 %v1630_v27 }
 0x751   : > { %v2471_v28 = vpop.eup %2470 }
 0x752   : > { %v1632_v30 = vmul.f32 %v2471_v28, %v1624_v18 }
 0x754   : > { %v1639_v32 = vmul.f32 %v2175_v29, %v1632_v30 }
 0x756   : > { %v1646_v33 = vadd.f32 %v2176_v31, %v1639_v32 }
 0x758   : > { %v1647_v34 = vpack.c.bf16 %v1646_v33, %v1646_v33 }
 0x75a   : > { %2327 = vmatmul.mubr.msk.bf16.vlgmr.msra.gmra.mrb[28].mxu0 %vm910_vm2, %v1647_v34 }
 0x82d   : > { %v1708_v41 = vpop.f32.mrb[28].mxu0 }
 0x82e   : > { %v1709_v42 = vadd.f32 %v2177_v40, %v1708_v41  ;;  %v2328_v43 = vpop.f32.mrb[29].mxu0 }
 0x82f   : > { %v1711_v44 = vpop.f32.mrb[30].mxu0 }
 0x830   : > { %v1715_v45 = vmul.f32 0.70710677, %v1709_v42  ;;  %v2329_v46 = vpop.f32.mrb[31].mxu0  ;;  %v1714_v48 = vmul.f32 0.5, %v1709_v42 }
 0x832   : > { %2472 = verf.f32 %v1715_v45 }
 0x83c   : > { %v2473_v47 = vpop.eup %2472 }
 0x83d   : > { %v1717_v49 = vadd.f32 1.0, %v2473_v47 }
 0x83f   : > { %v1718_v50 = vmul.f32 %v1717_v49, %v1714_v48 }
 0x841   : > { %v1719_v2 = vpack.c.bf16 %v1718_v50, %v1718_v50 }
 0x843   : > { %2347 = vmatmul.mubr.bf16.vlgmr.msra.gmra.mrb[20].mxu1 %v1719_v2 }
 0x916   : > { %v1825_v52 = vpop.f32.mrb[20].mxu1 }
 0x917   : > { %v1826_v53 = vadd.f32 %v2181_v51, %v1825_v52  ;;  %v2348_v54 = vpop.f32.mrb[21].mxu1 }
 0x918   : > { %v1828_v55 = vpop.f32.mrb[22].mxu1 }
 0x919   : > { %v2349_v56 = vpop.f32.mrb[23].mxu1  ;;  %v1831_v57 = vadd.f32 %v1826_v53, %v1646_v33 }
 0x91b   : > { %v1834_v58 = vsel %vm910_vm2, %v1831_v57, 0.0 }
 0x91c   : > { %1835 = vadd.xlane.f32.xlu0 %v1834_v58 }
 0x9a9   : > { %v1836_v59 = vpop.xlane.xlu0 %1835 }
 0x9aa   : > { %v1837_v60 = vmul.f32 0.03125, %v1836_v59 }
 0x9ac   : > { %v1838_v61 = vsub.f32 %v1831_v57, %v1837_v60 }
 0x9ae   : > { %v1839_v62 = vmul.f32 %v1838_v61, %v1838_v61 }
 0x9b0   : > { %v1840_v63 = vsel %vm910_vm2, %v1839_v62, 0.0 }
 0x9b1   : > { %1841 = vadd.xlane.f32.xlu0 %v1840_v63 }
 0xa3e   : > { %v1842_v0 = vpop.xlane.xlu0 %1841 }
 0xa3f   : > { %v1843_v1 = vmul.f32 0.03125, %v1842_v0 }
 0xa41   : > { %v1844_v3 = vadd.f32 1e-12, %v1843_v1 }
 0xa43   : > { %2474 = vrsqrt.f32 %v1844_v3 }
 0xa4d   : > { %v2475_v5 = vpop.eup %2474 }
 0xa4e   : > { %v1846_v7 = vmul.f32 %v2475_v5, %v1838_v61 }
 0xa50   : > { %v1853_v9 = vmul.f32 %v2190_v6, %v1846_v7 }
 0xa52   : > { %v1860_v10 = vadd.f32 %v2191_v8, %v1853_v9 }
 0xa54   : > { %1861 = vst.msk [vmem:[%s2925_s22] sm:$0xff] %vm910_vm2, %v1860_v10 }
 0xa55   : > { %2519 = shalt.err (!%p2516_p12)
}
 0xa56   : > { %s2520_s22 = scalar_lea.hbm %s3108_s15, 128  ;;  %s2524_s29 = scalar_lea.hbm %s3278_s13, 256 }
 0xa57   : > { %p2521_p1 = scmp.ne.s32.totalorder %s3108_s15, %s2520_s22  ;;  %p2525_p10 = scmp.lt.u32.totalorder %s3108_s15, %s3278_s13 }
 0xa58   : > { %p2526_p11 = scmp.lt.u32.totalorder %s2524_s29, %s2520_s22  ;;  %p2528_p0 = scmp.lt.u32.totalorder %s2520_s22, %s3108_s15 }
 0xa59   : > { %p2522_p2 = pnand %p2521_p1, %p3279_p7 }
 0xa5a   : > { %p2527_p9 = por %p2526_p11, %p2525_p10 }
 0xa5b   : > { %p2523_p5 = pneg %p2522_p2 }
 0xa5c   : > { %p2529_p13 = por %p2528_p0, %p2527_p9 }
 0xa5e   : > { %p2530_p4 = pnand %p2529_p13, %p2523_p5 }
 0xa60   : > { %2533 = shalt.err (!%p2530_p4)
}
 0xa61   : > { %2352 = dma.vmem_to_hbm [thread:$0]  (%p3279_p7), %s3110_s25, 128, %s3108_s15, %s1863_s24  }
 0xa62 PF: > { %s3280_s16 = sld [smem:[#allocation15_spill]]  ;;  %s3281_s26 = sld [smem:[#allocation9_spill]] }
 0xa63   : > { %s3282_s8 = sld [smem:[#allocation19_spill]] }
 0xa68   : > { %p2363_p6 = scmp.ge.s32.totalorder %s3280_s16, 2  ;;  %s1888_s0 = sand.u32 1, %s3281_s26  }
 0xa69   : > { %p3283_p3 = scmp.ne.s32.totalorder %s3282_s8, 0  ;;  %s1889_s14 = scalar_lea.sflag [#allocation5], %s1888_s0 }
 0xa6b   : > { %p2359_p8 = pnand %p2363_p6, %p3283_p3 }
 0xa6d   : > { %2571 = dma.done.wait (!%p2359_p8), %s1889_s14, 128  }
 0xa6e   : > { %2573 = vsyncadd (!%p2359_p8), %s1889_s14, 4294967168  ;;  %s34_s20 = sadd.s32 1, %s3280_s16   ;;  %s3284_s27 = sld [smem:[#allocation10_spill]] }
 0xa6f   : > { %p31_p12 = scmp.ge.s32.totalorder %s34_s20, 6   ;;  %s3285_s28 = sld [smem:[#allocation11_spill]] }
 0xa70   : > { %s3286_s29 = sld [smem:[#allocation20_spill]]  ;;  %s3287_s30 = sld [smem:[#allocation13_spill]] }
 0xa71   : > { %s3288_s0 = sld [smem:[#allocation14_spill]]  ;;  %s3289_s19 = sld [smem:[#allocation16_spill]] }
 0xa72   : > { %s3290_s1 = sld [smem:[#allocation17_spill]]  ;;  %33 = sbr.rel (!%p31_p12) target bundleno = 24 (0x18), region = 192 }
 0xa79   :  { %1894 = vsyncpa [#allocation4], 1 }
 0xa7a   :  { %1896 = vsyncpa [#allocation4 + $0x1], 1 }
 0xa7b   :  { %1897 = vsyncpa [#allocation5], 1 }
 0xa7c   :  { %1899 = vsyncpa [#allocation5 + $0x1], 1 }

</bundles_post_ra>
